<compile_context>
chip_gen: v7x
topology: tpu7x:2x2x1
jax: 0.10.0
libtpu: 0.0.40
codegen_flags: <defaults>
</compile_context>

<pallas_src>
import functools

import jax
import jax.numpy as jnp
from jax.experimental import pallas as pl
from jax.experimental.pallas import tpu as pltpu


# ------------------------------ configuration -------------------------------

TILE_N = 256          # voxel rows per grid step (fits VMEM on v5e/v6e/v7x)
_LN_EPS = 1e-5

_RESNAMES = ('coarse', 'medium', 'dense')
_POOL = {'coarse': 4, 'medium': 2, 'dense': 1}
_GRID_OUT = {'coarse': 64, 'medium': 32, 'dense': 16}
_HIDDEN3D = {'coarse': 128, 'medium': 64, 'dense': 64}
_OUT3D = {'coarse': 48, 'medium': 24, 'dense': 16}
_PREV_OUT = {'coarse': 0, 'medium': 48, 'dense': 24}
_TASK_OUT = (('offset', 3), ('rotations_score', 1), ('rotations', 4), ('width', 1))


def _round_up(x, m):
    return ((x + m - 1) // m) * m


# ------------------------------ Pallas kernels -------------------------------

def _res_compute(x_ref, pf_ref, plg_ref, wg_ref, bg_ref, lg_ref, lb_ref,
                 w1g_ref, w1p_ref, w1l_ref, b1_ref, w2_ref, b2_ref,
                 wh_ref, bh_ref, feat_ref, head_ref, eps):
    # 1x1x1 pointwise grid conv on the gathered (pooled) cells.  A pointwise
    # conv commutes with the voxel gather, so this equals gathering the dense
    # grid features of the reference.
    gf = jnp.dot(x_ref[...], wg_ref[...],
                 preferred_element_type=jnp.float32) + bg_ref[...]

    # LayerNorm over the channel (lane) dim, matching torch.nn.LayerNorm.
    mu = jnp.mean(gf, axis=-1, keepdims=True)
    var = jnp.mean((gf - mu) ** 2, axis=-1, keepdims=True)
    gn = (gf - mu) * jax.lax.rsqrt(var + eps) * lg_ref[...] + lb_ref[...]

    # First MLP layer.  The reference concatenates
    # (prev_features, grid_feats, prev_logits) before the linear layer; we
    # split W1 by input rows instead so no in-kernel lane concat is needed.
    h = jnp.dot(gn.astype(jnp.bfloat16), w1g_ref[...],
                preferred_element_type=jnp.float32)
    if pf_ref is not None:
        h = h + jnp.dot(pf_ref[...], w1p_ref[...],
                        preferred_element_type=jnp.float32)
        # prev_logits is a single column: outer product == broadcast multiply.
        h = h + plg_ref[...] * w1l_ref[...]
    h = jnp.maximum(h + b1_ref[...], 0.0)

    feats = jnp.dot(h.astype(jnp.bfloat16), w2_ref[...],
                    preferred_element_type=jnp.float32) + b2_ref[...]
    fb = feats.astype(jnp.bfloat16)
    feat_ref[...] = fb
    # Packed heads: occupancy logit (+ the 4 task heads at 'dense').
    head_ref[...] = jnp.dot(fb, wh_ref[...],
                            preferred_element_type=jnp.float32) + bh_ref[...]


def _fused_res0_kernel(x_ref, wg_ref, bg_ref, lg_ref, lb_ref, w1g_ref, b1_ref,
                       w2_ref, b2_ref, wh_ref, bh_ref, feat_ref, head_ref,
                       *, eps):
    _res_compute(x_ref, None, None, wg_ref, bg_ref, lg_ref, lb_ref,
                 w1g_ref, None, None, b1_ref, w2_ref, b2_ref, wh_ref, bh_ref,
                 feat_ref, head_ref, eps)


def _fused_res_kernel(x_ref, pf_ref, plg_ref, wg_ref, bg_ref, lg_ref, lb_ref,
                      w1g_ref, w1p_ref, w1l_ref, b1_ref, w2_ref, b2_ref,
                      wh_ref, bh_ref, feat_ref, head_ref, *, eps):
    _res_compute(x_ref, pf_ref, plg_ref, wg_ref, bg_ref, lg_ref, lb_ref,
                 w1g_ref, w1p_ref, w1l_ref, b1_ref, w2_ref, b2_ref, wh_ref,
                 bh_ref, feat_ref, head_ref, eps)


# ------------------------------ Pallas wrapper -------------------------------

def _row_spec(c):
    # Voxel-tiled operand: block (TILE_N, C) walking the row axis.
    return pl.BlockSpec((TILE_N, c), lambda i: (i, 0))


def _full_spec(arr):
    # Whole-array block (weights/biases, fetched once).
    return pl.BlockSpec(arr.shape, lambda i: (0,) * arr.ndim)


def fused_resolution(p, x_gathered, prev_feat=None, prev_logit=None,
                     eps=_LN_EPS):
    """One resolution of SPGNet, fused into a single tiled pallas_call."""
    n_pad = x_gathered.shape[0]
    assert n_pad % TILE_N == 0
    d_out = p['w2'].shape[1]
    n_heads = p['wh'].shape[1]
    has_prev = prev_feat is not None

    if has_prev:
        args = (x_gathered, prev_feat, prev_logit,
                p['wg'], p['bg'], p['ln_g'], p['ln_b'],
                p['w1g'], p['w1p'], p['w1l'], p['b1'],
                p['w2'], p['b2'], p['wh'], p['bh'])
        in_specs = ([_row_spec(x_gathered.shape[1]),
                     _row_spec(prev_feat.shape[1]),
                     _row_spec(1)]
                    + [_full_spec(a) for a in args[3:]])
        kernel = functools.partial(_fused_res_kernel, eps=eps)
    else:
        args = (x_gathered,
                p['wg'], p['bg'], p['ln_g'], p['ln_b'],
                p['w1g'], p['b1'],
                p['w2'], p['b2'], p['wh'], p['bh'])
        in_specs = ([_row_spec(x_gathered.shape[1])]
                    + [_full_spec(a) for a in args[1:]])
        kernel = functools.partial(_fused_res0_kernel, eps=eps)

    feat, heads = pl.pallas_call(
        kernel,
        out_shape=(jax.ShapeDtypeStruct((n_pad, d_out), jnp.bfloat16),
                   jax.ShapeDtypeStruct((n_pad, n_heads), jnp.float32)),
        grid=(n_pad // TILE_N,),
        in_specs=in_specs,
        out_specs=(_row_spec(d_out), _row_spec(n_heads)),
        compiler_params=pltpu.CompilerParams(
            dimension_semantics=("parallel",)),
    )(*args)
    return feat, heads


# -------------------------------- Upsampler ----------------------------------

_UPSAMPLE_OFFSETS = jnp.array(
    [[0, 0, 0, 0], [1, 0, 0, 0], [0, 1, 0, 0], [0, 0, 1, 0],
     [1, 1, 0, 0], [0, 1, 1, 0], [1, 0, 1, 0], [1, 1, 1, 0]], jnp.int32)
_UPSAMPLE_MUL = jnp.array([2, 2, 2, 1], jnp.int32)


def upsample_inds(voxel_inds):
    # (N,1,4)*(1,1,4) + (1,8,4) -> (N,8,4) -> (8N,4); matches the reference.
    return (voxel_inds[:, None, :] * _UPSAMPLE_MUL[None, None, :]
            + _UPSAMPLE_OFFSETS[None, :, :]).reshape(-1, 4)


# -------------------------------- Parameters ---------------------------------

def _dense_init(key, din, dout):
    kw, kb = jax.random.split(key)
    scale = 1.0 / float(max(din, 1)) ** 0.5
    w = jax.random.normal(kw, (din, dout), jnp.float32) * scale
    b = jax.random.normal(kb, (dout,), jnp.float32) * 0.01
    return w, b


def init_params(key, c_in):
    """Weights are packed / split / cast to bf16 ONCE here (never per call)."""
    params = {}
    keys = iter(jax.random.split(key, 64))
    for i, res in enumerate(_RESNAMES):
        cg, dh, dout, dprev = (_GRID_OUT[res], _HIDDEN3D[res],
                               _OUT3D[res], _PREV_OUT[res])
        has_prev = i > 0
        d_in3d = dprev + cg + (1 if has_prev else 0)

        # TODO(synk): cnn3d.C3D is not provided; substituted by avg-pool
        # downsampling + a pointwise 1x1x1 conv per resolution (wg/bg).
        wg, bg = _dense_init(next(keys), c_in, cg)
        # TODO(synk): spconv backbone3d is not provided; substituted by a
        # per-voxel 2-layer MLP with the reference input/hidden/output depths.
        w1, b1 = _dense_init(next(keys), d_in3d, dh)
        w2, b2 = _dense_init(next(keys), dh, dout)

        # Heads packed column-wise: occupancy logit first, then (at 'dense')
        # offset(3), rotations_score(1), rotations(4), width(1).
        head_ws, head_bs = [], []
        wo, bo = _dense_init(next(keys), dout, 1)
        head_ws.append(wo); head_bs.append(bo)
        if res == 'dense':
            for _, tdim in _TASK_OUT:
                wt, bt = _dense_init(next(keys), dout, tdim)
                head_ws.append(wt); head_bs.append(bt)
        wh = jnp.concatenate(head_ws, axis=1)
        bh = jnp.concatenate(head_bs, axis=0)

        p = {
            'wg': wg.astype(jnp.bfloat16),
            'bg': bg.reshape(1, cg),
            'ln_g': jnp.ones((1, cg), jnp.float32),
            'ln_b': jnp.zeros((1, cg), jnp.float32),
            # W1 split by input rows to match the reference concat order
            # (prev_features, grid_feats, prev_logits) without a lane concat.
            'w1g': w1[dprev:dprev + cg].astype(jnp.bfloat16),
            'b1': b1.reshape(1, dh),
            'w2': w2.astype(jnp.bfloat16),
            'b2': b2.reshape(1, dout),
            'wh': wh.astype(jnp.bfloat16),
            'bh': bh.reshape(1, -1),
        }
        if has_prev:
            p['w1p'] = w1[:dprev].astype(jnp.bfloat16)
            p['w1l'] = w1[dprev + cg:].reshape(1, dh)  # f32: VPU broadcast-mul
        params[res] = p
    return params


# ------------------------------- Forward pass ---------------------------------

def pool_grids(grid_input):
    """grid_input [B, Cin, D, H, W] -> per-res flat pooled grids [Dr*Hr*Wr*B, Cin]."""
    x = jnp.transpose(grid_input, (2, 3, 4, 0, 1)).astype(jnp.float32)
    d, h, w, b, c = x.shape
    pooled, dims = {}, {}
    for res in _RESNAMES:
        f = _POOL[res]
        dr, hr, wr = d // f, h // f, w // f
        xr = x.reshape(dr, f, hr, f, wr, f, b, c).mean(axis=(1, 3, 5))
        pooled[res] = xr.reshape(dr * hr * wr * b, c).astype(jnp.bfloat16)
        dims[res] = (hr, wr, b)
    return pooled, dims


def _flat_voxel_index(voxel_inds, dims):
    hr, wr, b = dims
    vi = voxel_inds.astype(jnp.int32)
    return ((vi[:, 0] * hr + vi[:, 1]) * wr + vi[:, 2]) * b + vi[:, 3]


def spgnet_forward(params, grid_input, voxel_inds_16):
    pooled, dims = pool_grids(grid_input)

    voxel_outputs = {}
    voxel_inds = voxel_inds_16            # (N, 4) in (x, y, z, b) order
    n = voxel_inds.shape[0]
    prev_feat = prev_logit = None

    for res in _RESNAMES:
        n_pad = _round_up(max(n, 1), TILE_N)
        flat_idx = _flat_voxel_index(voxel_inds, dims[res])
        flat_idx = jnp.pad(flat_idx, (0, n_pad - n))
        x_gathered = jnp.take(pooled[res], flat_idx, axis=0)   # [n_pad, Cin]

        feat, heads = fused_resolution(params[res], x_gathered,
                                       prev_feat, prev_logit)

        logits = heads[:n, 0:1]
        voxel_outputs[res] = (logits, voxel_inds)

        if res == 'dense':
            voxel_outputs['offset'] = (heads[:n, 1:4], voxel_inds)
            voxel_outputs['rotations_score'] = (heads[:n, 4:5], voxel_inds)
            voxel_outputs['rotations'] = (heads[:n, 5:9], voxel_inds)
            voxel_outputs['width'] = (heads[:n, 9:10], voxel_inds)
            break

        # Occupancy filtering + x8 upsample to the next resolution.
        occupancy = heads[:n, 0] > 0.0
        # TODO(synk): one scalar host sync per resolution; the reference's
        # early return / data-dependent voxel count cannot be expressed with
        # static shapes, so only the occupied count is read back.
        count = int(jax.device_get(jnp.sum(occupancy.astype(jnp.int32))))
        if count == 0:
            return voxel_outputs
        # Stable partition: occupied voxels to the front, original order kept
        # (identical result order to boolean-mask indexing in the reference).
        order = jnp.argsort(1 - occupancy.astype(jnp.int32), stable=True)
        keep = order[:count]

        voxel_inds = upsample_inds(jnp.take(voxel_inds, keep, axis=0))
        n_next = 8 * count
        n_next_pad = _round_up(n_next, TILE_N)
        rep_idx = jnp.repeat(keep, 8)                 # x8 replication indices
        rep_idx = jnp.pad(rep_idx, (0, n_next_pad - n_next))
        prev_feat = jnp.take(feat, rep_idx, axis=0)            # bf16 [n_next_pad, Dprev]
        prev_logit = jnp.take(heads[:, 0:1], rep_idx, axis=0)  # f32  [n_next_pad, 1]
        n = n_next

    return voxel_outputs


# ----------------------------------- main -------------------------------------

if __name__ == "__main__":
    key = jax.random.PRNGKey(0)
    kparams, kgrid = jax.random.split(key)

    B, Cin, D = 2, 4, 16
    params = init_params(kparams, Cin)
    grid_input = jax.random.normal(kgrid, (B, Cin, D, D, D), jnp.float32)

    # voxel_inds_16: all coarse-resolution voxels as (x, y, z, b).  The last
    # row is the maximal index so voxel_inds_16[-1][:3] + 1 gives coarse dims.
    dc = D // 4
    xs, ys, zs, bs = jnp.meshgrid(jnp.arange(dc), jnp.arange(dc),
                                  jnp.arange(dc), jnp.arange(B), indexing='ij')
    voxel_inds_16 = jnp.stack([xs, ys, zs, bs],
                              axis=-1).reshape(-1, 4).astype(jnp.int32)

    out = spgnet_forward(params, grid_input, voxel_inds_16)
    jax.tree_util.tree_map(jax.block_until_ready, out)
    print("KERNEL_OK")
</pallas_src>

<mosaic_0001>
module attributes {stable_mosaic.version = 11 : i64} {
  func.func @_fused_res0_kernel(%arg0: i32, %arg1: memref<256x4xbf16, #tpu.memory_space<vmem>>, %arg2: memref<4x64xbf16, #tpu.memory_space<vmem>>, %arg3: memref<1x64xf32, #tpu.memory_space<vmem>>, %arg4: memref<1x64xf32, #tpu.memory_space<vmem>>, %arg5: memref<1x64xf32, #tpu.memory_space<vmem>>, %arg6: memref<64x128xbf16, #tpu.memory_space<vmem>>, %arg7: memref<1x128xf32, #tpu.memory_space<vmem>>, %arg8: memref<128x48xbf16, #tpu.memory_space<vmem>>, %arg9: memref<1x48xf32, #tpu.memory_space<vmem>>, %arg10: memref<48x1xbf16, #tpu.memory_space<vmem>>, %arg11: memref<1x1xf32, #tpu.memory_space<vmem>>, %arg12: memref<256x48xbf16, #tpu.memory_space<vmem>>, %arg13: memref<256x1xf32, #tpu.memory_space<vmem>>) attributes {dimension_semantics = [#tpu.dimension_semantics<parallel>], iteration_bounds = array<i64: 1>, scalar_prefetch = 0 : i64, scratch_operands = 0 : i64, tpu.core_type = #tpu.core_type<tc>, window_params = [{transform_indices = @transform_0, window_bounds = array<i64: 256, 4>}, {pipeline_mode = #tpu.pipeline_mode<synchronous>, transform_indices = @transform_1, window_bounds = array<i64: 4, 64>}, {pipeline_mode = #tpu.pipeline_mode<synchronous>, transform_indices = @transform_2, window_bounds = array<i64: 1, 64>}, {pipeline_mode = #tpu.pipeline_mode<synchronous>, transform_indices = @transform_3, window_bounds = array<i64: 1, 64>}, {pipeline_mode = #tpu.pipeline_mode<synchronous>, transform_indices = @transform_4, window_bounds = array<i64: 1, 64>}, {pipeline_mode = #tpu.pipeline_mode<synchronous>, transform_indices = @transform_5, window_bounds = array<i64: 64, 128>}, {pipeline_mode = #tpu.pipeline_mode<synchronous>, transform_indices = @transform_6, window_bounds = array<i64: 1, 128>}, {pipeline_mode = #tpu.pipeline_mode<synchronous>, transform_indices = @transform_7, window_bounds = array<i64: 128, 48>}, {pipeline_mode = #tpu.pipeline_mode<synchronous>, transform_indices = @transform_8, window_bounds = array<i64: 1, 48>}, {pipeline_mode = #tpu.pipeline_mode<synchronous>, transform_indices = @transform_9, window_bounds = array<i64: 48, 1>}, {pipeline_mode = #tpu.pipeline_mode<synchronous>, transform_indices = @transform_10, window_bounds = array<i64: 1, 1>}, {transform_indices = @transform_11, window_bounds = array<i64: 256, 48>}, {transform_indices = @transform_12, window_bounds = array<i64: 256, 1>}]} {
    %c0 = arith.constant 0 : index
    %c0_0 = arith.constant 0 : index
    %0 = vector.load %arg1[%c0, %c0_0] : memref<256x4xbf16, #tpu.memory_space<vmem>>, vector<256x4xbf16>
    %c0_1 = arith.constant 0 : index
    %c0_2 = arith.constant 0 : index
    %1 = vector.load %arg2[%c0_1, %c0_2] : memref<4x64xbf16, #tpu.memory_space<vmem>>, vector<4x64xbf16>
    %cst = arith.constant dense<0.000000e+00> : vector<256x64xf32>
    %2 = tpu.matmul %0, %1, %cst {dimension_numbers = #tpu.dot_dimension_numbers<[1], [0], [0], [1], [0, 0, 1, 1], [], []>} : vector<256x4xbf16>, vector<4x64xbf16>, vector<256x64xf32> -> vector<256x64xf32>
    %c0_3 = arith.constant 0 : index
    %c0_4 = arith.constant 0 : index
    %3 = vector.load %arg3[%c0_3, %c0_4] : memref<1x64xf32, #tpu.memory_space<vmem>>, vector<1x64xf32>
    %4 = vector.broadcast %3 : vector<1x64xf32> to vector<256x64xf32>
    %5 = arith.addf %2, %4 : vector<256x64xf32>
    %cst_5 = arith.constant dense<0.000000e+00> : vector<256xf32>
    %6 = vector.multi_reduction <add>, %5, %cst_5 [1] : vector<256x64xf32> to vector<256xf32>
    %7 = vector.shape_cast %6 : vector<256xf32> to vector<256x1xf32>
    %cst_6 = arith.constant 6.400000e+01 : f32
    %8 = vector.broadcast %cst_6 : f32 to vector<256x1xf32>
    %9 = arith.divf %7, %8 : vector<256x1xf32>
    %10 = vector.broadcast %9 : vector<256x1xf32> to vector<256x64xf32>
    %11 = arith.subf %5, %10 : vector<256x64xf32>
    %12 = arith.mulf %11, %11 : vector<256x64xf32>
    %cst_7 = arith.constant dense<0.000000e+00> : vector<256xf32>
    %13 = vector.multi_reduction <add>, %12, %cst_7 [1] : vector<256x64xf32> to vector<256xf32>
    %14 = vector.shape_cast %13 : vector<256xf32> to vector<256x1xf32>
    %cst_8 = arith.constant 6.400000e+01 : f32
    %15 = vector.broadcast %cst_8 : f32 to vector<256x1xf32>
    %16 = arith.divf %14, %15 : vector<256x1xf32>
    %17 = vector.broadcast %9 : vector<256x1xf32> to vector<256x64xf32>
    %18 = arith.subf %5, %17 : vector<256x64xf32>
    %cst_9 = arith.constant 9.99999974E-6 : f32
    %19 = vector.broadcast %cst_9 : f32 to vector<256x1xf32>
    %20 = arith.addf %16, %19 : vector<256x1xf32>
    %21 = math.rsqrt %20 : vector<256x1xf32>
    %22 = vector.broadcast %21 : vector<256x1xf32> to vector<256x64xf32>
    %23 = arith.mulf %18, %22 : vector<256x64xf32>
    %c0_10 = arith.constant 0 : index
    %c0_11 = arith.constant 0 : index
    %24 = vector.load %arg4[%c0_10, %c0_11] : memref<1x64xf32, #tpu.memory_space<vmem>>, vector<1x64xf32>
    %25 = vector.broadcast %24 : vector<1x64xf32> to vector<256x64xf32>
    %26 = arith.mulf %23, %25 : vector<256x64xf32>
    %c0_12 = arith.constant 0 : index
    %c0_13 = arith.constant 0 : index
    %27 = vector.load %arg5[%c0_12, %c0_13] : memref<1x64xf32, #tpu.memory_space<vmem>>, vector<1x64xf32>
    %28 = vector.broadcast %27 : vector<1x64xf32> to vector<256x64xf32>
    %29 = arith.addf %26, %28 : vector<256x64xf32>
    %30 = arith.truncf %29 : vector<256x64xf32> to vector<256x64xbf16>
    %c0_14 = arith.constant 0 : index
    %c0_15 = arith.constant 0 : index
    %31 = vector.load %arg6[%c0_14, %c0_15] : memref<64x128xbf16, #tpu.memory_space<vmem>>, vector<64x128xbf16>
    %cst_16 = arith.constant dense<0.000000e+00> : vector<256x128xf32>
    %32 = tpu.matmul %30, %31, %cst_16 {dimension_numbers = #tpu.dot_dimension_numbers<[1], [0], [0], [1], [0, 0, 1, 1], [], []>} : vector<256x64xbf16>, vector<64x128xbf16>, vector<256x128xf32> -> vector<256x128xf32>
    %c0_17 = arith.constant 0 : index
    %c0_18 = arith.constant 0 : index
    %33 = vector.load %arg7[%c0_17, %c0_18] : memref<1x128xf32, #tpu.memory_space<vmem>>, vector<1x128xf32>
    %34 = vector.broadcast %33 : vector<1x128xf32> to vector<256x128xf32>
    %35 = arith.addf %32, %34 : vector<256x128xf32>
    %cst_19 = arith.constant 0.000000e+00 : f32
    %36 = vector.broadcast %cst_19 : f32 to vector<256x128xf32>
    %37 = arith.maximumf %35, %36 : vector<256x128xf32>
    %38 = arith.truncf %37 : vector<256x128xf32> to vector<256x128xbf16>
    %c0_20 = arith.constant 0 : index
    %c0_21 = arith.constant 0 : index
    %39 = vector.load %arg8[%c0_20, %c0_21] : memref<128x48xbf16, #tpu.memory_space<vmem>>, vector<128x48xbf16>
    %cst_22 = arith.constant dense<0.000000e+00> : vector<256x48xf32>
    %40 = tpu.matmul %38, %39, %cst_22 {dimension_numbers = #tpu.dot_dimension_numbers<[1], [0], [0], [1], [0, 0, 1, 1], [], []>} : vector<256x128xbf16>, vector<128x48xbf16>, vector<256x48xf32> -> vector<256x48xf32>
    %c0_23 = arith.constant 0 : index
    %c0_24 = arith.constant 0 : index
    %41 = vector.load %arg9[%c0_23, %c0_24] : memref<1x48xf32, #tpu.memory_space<vmem>>, vector<1x48xf32>
    %42 = vector.broadcast %41 : vector<1x48xf32> to vector<256x48xf32>
    %43 = arith.addf %40, %42 : vector<256x48xf32>
    %44 = arith.truncf %43 : vector<256x48xf32> to vector<256x48xbf16>
    %c0_25 = arith.constant 0 : index
    %c0_26 = arith.constant 0 : index
    %45 = vector.load %arg12[%c0_25, %c0_26] : memref<256x48xbf16, #tpu.memory_space<vmem>>, vector<256x48xbf16>
    tpu.vector_store %arg12[%c0_25, %c0_26], %44 {strides = array<i32>} : memref<256x48xbf16, #tpu.memory_space<vmem>>, vector<256x48xbf16>,
    %c0_27 = arith.constant 0 : index
    %c0_28 = arith.constant 0 : index
    %46 = vector.load %arg10[%c0_27, %c0_28] : memref<48x1xbf16, #tpu.memory_space<vmem>>, vector<48x1xbf16>
    %cst_29 = arith.constant dense<0.000000e+00> : vector<256x1xf32>
    %47 = tpu.matmul %44, %46, %cst_29 {dimension_numbers = #tpu.dot_dimension_numbers<[1], [0], [0], [1], [0, 0, 1, 1], [], []>} : vector<256x48xbf16>, vector<48x1xbf16>, vector<256x1xf32> -> vector<256x1xf32>
    %c0_30 = arith.constant 0 : index
    %c0_31 = arith.constant 0 : index
    %48 = vector.load %arg11[%c0_30, %c0_31] : memref<1x1xf32, #tpu.memory_space<vmem>>, vector<1x1xf32>
    %49 = vector.broadcast %48 : vector<1x1xf32> to vector<256x1xf32>
    %50 = arith.addf %47, %49 : vector<256x1xf32>
    %c0_32 = arith.constant 0 : index
    %c0_33 = arith.constant 0 : index
    %51 = vector.load %arg13[%c0_32, %c0_33] : memref<256x1xf32, #tpu.memory_space<vmem>>, vector<256x1xf32>
    tpu.vector_store %arg13[%c0_32, %c0_33], %50 {strides = array<i32>} : memref<256x1xf32, #tpu.memory_space<vmem>>, vector<256x1xf32>,
    return
  }
  func.func @transform_0(%arg0: i32) -> (i32, i32) {
    %c0_i32 = arith.constant 0 : i32
    %c0_i32_0 = arith.constant 0 : i32
    return %arg0, %c0_i32 : i32, i32
  }
  func.func @transform_1(%arg0: i32) -> (i32, i32) {
    %c0_i32 = arith.constant 0 : i32
    %c0_i32_0 = arith.constant 0 : i32
    %c0_i32_1 = arith.constant 0 : i32
    return %c0_i32, %c0_i32_0 : i32, i32
  }
  func.func @transform_2(%arg0: i32) -> (i32, i32) {
    %c0_i32 = arith.constant 0 : i32
    %c0_i32_0 = arith.constant 0 : i32
    %c0_i32_1 = arith.constant 0 : i32
    return %c0_i32, %c0_i32_0 : i32, i32
  }
  func.func @transform_3(%arg0: i32) -> (i32, i32) {
    %c0_i32 = arith.constant 0 : i32
    %c0_i32_0 = arith.constant 0 : i32
    %c0_i32_1 = arith.constant 0 : i32
    return %c0_i32, %c0_i32_0 : i32, i32
  }
  func.func @transform_4(%arg0: i32) -> (i32, i32) {
    %c0_i32 = arith.constant 0 : i32
    %c0_i32_0 = arith.constant 0 : i32
    %c0_i32_1 = arith.constant 0 : i32
    return %c0_i32, %c0_i32_0 : i32, i32
  }
  func.func @transform_5(%arg0: i32) -> (i32, i32) {
    %c0_i32 = arith.constant 0 : i32
    %c0_i32_0 = arith.constant 0 : i32
    %c0_i32_1 = arith.constant 0 : i32
    return %c0_i32, %c0_i32_0 : i32, i32
  }
  func.func @transform_6(%arg0: i32) -> (i32, i32) {
    %c0_i32 = arith.constant 0 : i32
    %c0_i32_0 = arith.constant 0 : i32
    %c0_i32_1 = arith.constant 0 : i32
    return %c0_i32, %c0_i32_0 : i32, i32
  }
  func.func @transform_7(%arg0: i32) -> (i32, i32) {
    %c0_i32 = arith.constant 0 : i32
    %c0_i32_0 = arith.constant 0 : i32
    %c0_i32_1 = arith.constant 0 : i32
    return %c0_i32, %c0_i32_0 : i32, i32
  }
  func.func @transform_8(%arg0: i32) -> (i32, i32) {
    %c0_i32 = arith.constant 0 : i32
    %c0_i32_0 = arith.constant 0 : i32
    %c0_i32_1 = arith.constant 0 : i32
    return %c0_i32, %c0_i32_0 : i32, i32
  }
  func.func @transform_9(%arg0: i32) -> (i32, i32) {
    %c0_i32 = arith.constant 0 : i32
    %c0_i32_0 = arith.constant 0 : i32
    %c0_i32_1 = arith.constant 0 : i32
    return %c0_i32, %c0_i32_0 : i32, i32
  }
  func.func @transform_10(%arg0: i32) -> (i32, i32) {
    %c0_i32 = arith.constant 0 : i32
    %c0_i32_0 = arith.constant 0 : i32
    %c0_i32_1 = arith.constant 0 : i32
    return %c0_i32, %c0_i32_0 : i32, i32
  }
  func.func @transform_11(%arg0: i32) -> (i32, i32) {
    %c0_i32 = arith.constant 0 : i32
    %c0_i32_0 = arith.constant 0 : i32
    return %arg0, %c0_i32 : i32, i32
  }
  func.func @transform_12(%arg0: i32) -> (i32, i32) {
    %c0_i32 = arith.constant 0 : i32
    %c0_i32_0 = arith.constant 0 : i32
    return %arg0, %c0_i32 : i32, i32
  }
}

</mosaic_0001>

<bundles_post_ra>
// kernel: tpu_custom_call.1
= control target key start
LH: loop header
LB: loop body
LE: loop exit
PB: predicated region body
PF: predicated region fallthrough
CT: control target
= control target key end

     0   :  { %vm212_vm0 = vcmask 1041408   ;;  %vm163_vm1 = vcmask 31744   ;;  %vm377_vm2 = vcmask 523264   ;;  %vm1545_vm3 = vcmask 388096   ;;  %s3384_s1 = inlined_call_operand.vmem [shape: bf16[4,64], index: 1, kind: input, shape index: {}]   ;;  %s3385_s0 = inlined_call_operand.vmem [shape: bf16[256,4], index: 0, kind: input, shape index: {}]   ;;  %s3386_s2 = inlined_call_operand.vmem [shape: f32[1,64], index: 2, kind: input, shape index: {}]   ;;  %s3387_s5 = inlined_call_operand.vmem [shape: bf16[64,128], index: 5, kind: input, shape index: {}]   ;;  %s3388_s7 = inlined_call_operand.vmem [shape: bf16[128,48], index: 7, kind: input, shape index: {}]   ;;  %s3389_s3 = inlined_call_operand.vmem [shape: f32[1,64], index: 3, kind: input, shape index: {}]   ;;  %s3390_s4 = inlined_call_operand.vmem [shape: f32[1,64], index: 4, kind: input, shape index: {}]   ;;  %s3391_s9 = inlined_call_operand.vmem [shape: bf16[48,1], index: 9, kind: input, shape index: {}]   ;;  %s3392_s6 = inlined_call_operand.vmem [shape: f32[1,128], index: 6, kind: input, shape index: {}]   ;;  %s3393_s10 = inlined_call_operand.<no memory space> [shape: f32[1,1], index: 10, kind: input, shape index: {}]   ;;  %s3394_s8 = inlined_call_operand.vmem [shape: f32[1,48], index: 8, kind: input, shape index: {}]   ;;  %s3395_s11 = inlined_call_operand.vmem [shape: bf16[256,48], index: 11, kind: output, shape index: {0}]   ;;  %s3396_s12 = inlined_call_operand.vmem [shape: f32[256,1], index: 12, kind: output, shape index: {1}]  }
   0x1   :  { %v75_v0 = vld [vmem:[%s3384_s1] sm:$0x3]  ;;  %v2251_v3 = vld [vmem:[%s3385_s0 + $0x8] sm:$0xff]   ;;  %v2252_v4 = vld [vmem:[%s3385_s0 + $0x10] sm:$0xff]   ;;  %vm1609_vm4 = vcmask 392192   ;;  %vm1819_vm5 = vcmask 7168  }
   0x2   :  { %2249 = vmatprep.subr.msk.bf16.mxu0 %vm212_vm0, %v75_v0  ;;  %v214_v1 = vsel %vm212_vm0, %v75_v0, 0  ;;  %v2250_v2 = vld [vmem:[%s3385_s0] sm:$0xff]   ;;  %v2253_v5 = vld [vmem:[%s3385_s0 + $0x18] sm:$0xff]   ;;  %v2255_v7 = vld [vmem:[%s3385_s0 + $0x28] sm:$0xff]  }
   0x3   :  { %2090 = vmatpush3.bf16.msra.mxu0 %v214_v1  ;;  %2091 = vmatprep.mubr.msk.bf16.mxu0 %vm163_vm1, %v2250_v2  ;;  %v2254_v6 = vld [vmem:[%s3385_s0 + $0x20] sm:$0xff]   ;;  %v2256_v8 = vld [vmem:[%s3385_s0 + $0x30] sm:$0xff]   ;;  %v2257_v9 = vld [vmem:[%s3385_s0 + $0x38] sm:$0xff]  }
   0x4   :  { %v2258_v10 = vld [vmem:[%s3385_s0 + $0x40] sm:$0xff]   ;;  %v2259_v11 = vld [vmem:[%s3385_s0 + $0x48] sm:$0xff]   ;;  %v2260_v12 = vld [vmem:[%s3385_s0 + $0x50] sm:$0xff]  }
   0x5   :  { %v2261_v13 = vld [vmem:[%s3385_s0 + $0x58] sm:$0xff]   ;;  %v2262_v14 = vld [vmem:[%s3385_s0 + $0x60] sm:$0xff]   ;;  %v2263_v15 = vld [vmem:[%s3385_s0 + $0x68] sm:$0xff]  }
   0x6   :  { %2092 = vmatmul.mubr.msk.bf16.vlgmr.msra.gmra.mrb[0].mxu0 %vm163_vm1, %v2251_v3  ;;  %v2264_v16 = vld [vmem:[%s3385_s0 + $0x70] sm:$0xff]   ;;  %v2265_v17 = vld [vmem:[%s3385_s0 + $0x78] sm:$0xff]   ;;  %v2480_v18 = vld [vmem:[%s3386_s2] ss:$0 sm:$0xff] }
   0x7   :  { %2095 = vmatprep.mubr.msk.bf16.mxu0 %vm163_vm1, %v2252_v4 }
   0xe   :  { %2096 = vmatmul.mubr.msk.bf16.gmra.mrb[4].mxu0 %vm163_vm1, %v2253_v5 }
   0xf   :  { %2099 = vmatprep.mubr.msk.bf16.mxu0 %vm163_vm1, %v2254_v6 }
  0x16   :  { %2100 = vmatmul.mubr.msk.bf16.gmra.mrb[8].mxu0 %vm163_vm1, %v2255_v7 }
  0x17   :  { %2103 = vmatprep.mubr.msk.bf16.mxu0 %vm163_vm1, %v2256_v8 }
  0x1e   :  { %2104 = vmatmul.mubr.msk.bf16.gmra.mrb[12].mxu0 %vm163_vm1, %v2257_v9 }
  0x1f   :  { %2107 = vmatprep.mubr.msk.bf16.mxu0 %vm163_vm1, %v2258_v10 }
  0x26   :  { %2108 = vmatmul.mubr.msk.bf16.gmra.mrb[16].mxu0 %vm163_vm1, %v2259_v11 }
  0x27   :  { %2111 = vmatprep.mubr.msk.bf16.mxu0 %vm163_vm1, %v2260_v12 }
  0x2e   :  { %2112 = vmatmul.mubr.msk.bf16.gmra.mrb[20].mxu0 %vm163_vm1, %v2261_v13 }
  0x2f   :  { %2115 = vmatprep.mubr.msk.bf16.mxu0 %vm163_vm1, %v2262_v14 }
  0x36   :  { %2116 = vmatmul.mubr.msk.bf16.gmra.mrb[24].mxu0 %vm163_vm1, %v2263_v15 }
  0x37   :  { %2119 = vmatprep.mubr.msk.bf16.mxu0 %vm163_vm1, %v2264_v16 }
  0x3e   :  { %2120 = vmatmul.mubr.msk.bf16.gmra.mrb[28].mxu0 %vm163_vm1, %v2265_v17 }
  0xd9   :  { %v2093_v19 = vpop.f32.mrb[0].mxu0 }
  0xda   :  { %v2483_v20 = vadd.f32 %v2093_v19, %v2480_v18  ;;  %v250_v21 = vpop.f32.mrb[1].mxu0 }
  0xdb   :  { %v2486_v22 = vadd.f32 %v2480_v18, %v250_v21  ;;  %v2094_v23 = vpop.f32.mrb[2].mxu0 }
  0xdc   :  { %v2489_v24 = vadd.f32 %v2094_v23, %v2480_v18  ;;  %v253_v25 = vpop.f32.mrb[3].mxu0  ;;  %v384_v26 = vsel %vm377_vm2, %v2483_v20, 0.0 }
  0xdd   :  { %v2494_v27 = vadd.f32 %v2480_v18, %v253_v25  ;;  %385 = vadd.xlane.f32.xlu1 %v384_v26  ;;  %v378_v28 = vsel %vm377_vm2, %v2486_v22, 0.0 }
  0xde   :  { %379 = vadd.xlane.f32.xlu0 %v378_v28  ;;  %v387_v29 = vsel %vm377_vm2, %v2489_v24, 0.0 }
  0xdf   :  { %v381_v31 = vsel %vm377_vm2, %v2494_v27, 0.0 }
  0xe1   :  { %388 = vadd.xlane.f32.xlu1 %v387_v29  ;;  %v2097_v30 = vpop.f32.mrb[4].mxu0 }
  0xe2   :  { %v266_v32 = vpop.f32.mrb[5].mxu0  ;;  %382 = vadd.xlane.f32.xlu0 %v381_v31  ;;  %v2506_v36 = vadd.f32 %v2097_v30, %v2480_v18 }
  0xe3   :  { %v2503_v33 = vadd.f32 %v2480_v18, %v266_v32  ;;  %v2098_v34 = vpop.f32.mrb[6].mxu0 }
  0xe4   :  { %v269_v35 = vpop.f32.mrb[7].mxu0  ;;  %v2514_v39 = vadd.f32 %v2098_v34, %v2480_v18  ;;  %v396_v42 = vsel %vm377_vm2, %v2506_v36, 0.0 }
  0xe5   :  { %v2509_v37 = vadd.f32 %v2480_v18, %v269_v35  ;;  %v390_v38 = vsel %vm377_vm2, %v2503_v33, 0.0 }
  0xe6   :  { %391 = vadd.xlane.f32.xlu0 %v390_v38  ;;  %v399_v46 = vsel %vm377_vm2, %v2514_v39, 0.0 }
  0xe7   :  { %v393_v40 = vsel %vm377_vm2, %v2509_v37, 0.0 }
  0xe8   :  { %394 = vadd.xlane.f32.xlu1 %v393_v40 }
  0xe9   :  { %v2101_v41 = vpop.f32.mrb[8].mxu0 }
  0xea   :  { %v282_v43 = vpop.f32.mrb[9].mxu0  ;;  %397 = vadd.xlane.f32.xlu0 %v396_v42  ;;  %v2526_v48 = vadd.f32 %v2101_v41, %v2480_v18 }
  0xeb   :  { %v2521_v44 = vadd.f32 %v2480_v18, %v282_v43  ;;  %v2102_v45 = vpop.f32.mrb[10].mxu0 }
  0xec   :  { %v285_v47 = vpop.f32.mrb[11].mxu0  ;;  %400 = vadd.xlane.f32.xlu1 %v399_v46  ;;  %v2534_v51 = vadd.f32 %v2102_v45, %v2480_v18  ;;  %v408_v54 = vsel %vm377_vm2, %v2526_v48, 0.0 }
  0xed   :  { %v2529_v49 = vadd.f32 %v2480_v18, %v285_v47  ;;  %v402_v50 = vsel %vm377_vm2, %v2521_v44, 0.0 }
  0xee   :  { %403 = vadd.xlane.f32.xlu0 %v402_v50  ;;  %v411_v58 = vsel %vm377_vm2, %v2534_v51, 0.0 }
  0xef   :  { %v405_v52 = vsel %vm377_vm2, %v2529_v49, 0.0 }
  0xf0   :  { %406 = vadd.xlane.f32.xlu1 %v405_v52 }
  0xf1   :  { %v2105_v53 = vpop.f32.mrb[12].mxu0 }
  0xf2   :  { %v298_v55 = vpop.f32.mrb[13].mxu0  ;;  %409 = vadd.xlane.f32.xlu0 %v408_v54  ;;  %v2546_v60 = vadd.f32 %v2105_v53, %v2480_v18 }
  0xf3   :  { %v2541_v56 = vadd.f32 %v2480_v18, %v298_v55  ;;  %v2106_v57 = vpop.f32.mrb[14].mxu0 }
  0xf4   :  { %v301_v59 = vpop.f32.mrb[15].mxu0  ;;  %412 = vadd.xlane.f32.xlu1 %v411_v58  ;;  %v2554_v63 = vadd.f32 %v2106_v57, %v2480_v18  ;;  %v420_v2 = vsel %vm377_vm2, %v2546_v60, 0.0 }
  0xf5   :  { %v2549_v61 = vadd.f32 %v2480_v18, %v301_v59  ;;  %v414_v62 = vsel %vm377_vm2, %v2541_v56, 0.0 }
  0xf6   :  { %415 = vadd.xlane.f32.xlu0 %v414_v62  ;;  %v423_v6 = vsel %vm377_vm2, %v2554_v63, 0.0 }
  0xf7   :  { %v417_v0 = vsel %vm377_vm2, %v2549_v61, 0.0 }
  0xf8   :  { %418 = vadd.xlane.f32.xlu1 %v417_v0 }
  0xf9   :  { %v2109_v1 = vpop.f32.mrb[16].mxu0 }
  0xfa   :  { %v314_v3 = vpop.f32.mrb[17].mxu0  ;;  %421 = vadd.xlane.f32.xlu0 %v420_v2  ;;  %v2566_v8 = vadd.f32 %v2109_v1, %v2480_v18 }
  0xfb   :  { %v2561_v4 = vadd.f32 %v2480_v18, %v314_v3  ;;  %v2110_v5 = vpop.f32.mrb[18].mxu0 }
  0xfc   :  { %v317_v7 = vpop.f32.mrb[19].mxu0  ;;  %424 = vadd.xlane.f32.xlu1 %v423_v6  ;;  %v2574_v11 = vadd.f32 %v2110_v5, %v2480_v18  ;;  %v432_v14 = vsel %vm377_vm2, %v2566_v8, 0.0 }
  0xfd   :  { %v2569_v9 = vadd.f32 %v2480_v18, %v317_v7  ;;  %v426_v10 = vsel %vm377_vm2, %v2561_v4, 0.0 }
  0xfe   :  { %427 = vadd.xlane.f32.xlu0 %v426_v10  ;;  %v435_v19 = vsel %vm377_vm2, %v2574_v11, 0.0 }
  0xff   :  { %v429_v12 = vsel %vm377_vm2, %v2569_v9, 0.0 }
 0x100   :  { %430 = vadd.xlane.f32.xlu1 %v429_v12 }
 0x101   :  { %v2113_v13 = vpop.f32.mrb[20].mxu0 }
 0x102   :  { %v330_v15 = vpop.f32.mrb[21].mxu0  ;;  %433 = vadd.xlane.f32.xlu0 %v432_v14  ;;  %v2586_v23 = vadd.f32 %v2113_v13, %v2480_v18 }
 0x103   :  { %v2581_v16 = vadd.f32 %v2480_v18, %v330_v15  ;;  %v2114_v17 = vpop.f32.mrb[22].mxu0 }
 0x104   :  { %v333_v21 = vpop.f32.mrb[23].mxu0  ;;  %436 = vadd.xlane.f32.xlu1 %v435_v19  ;;  %v2594_v28 = vadd.f32 %v2114_v17, %v2480_v18  ;;  %v444_v31 = vsel %vm377_vm2, %v2586_v23, 0.0 }
 0x105   :  { %v2589_v25 = vadd.f32 %v2480_v18, %v333_v21  ;;  %v438_v26 = vsel %vm377_vm2, %v2581_v16, 0.0 }
 0x106   :  { %439 = vadd.xlane.f32.xlu0 %v438_v26  ;;  %v447_v38 = vsel %vm377_vm2, %v2594_v28, 0.0 }
 0x107   :  { %v441_v29 = vsel %vm377_vm2, %v2589_v25, 0.0 }
 0x108   :  { %442 = vadd.xlane.f32.xlu1 %v441_v29 }
 0x109   :  { %v2117_v30 = vpop.f32.mrb[24].mxu0 }
 0x10a   :  { %v346_v32 = vpop.f32.mrb[25].mxu0  ;;  %445 = vadd.xlane.f32.xlu0 %v444_v31  ;;  %v2606_v41 = vadd.f32 %v2117_v30, %v2480_v18 }
 0x10b   :  { %v2601_v34 = vadd.f32 %v2480_v18, %v346_v32  ;;  %v2118_v35 = vpop.f32.mrb[26].mxu0 }
 0x10c   :  { %v349_v40 = vpop.f32.mrb[27].mxu0  ;;  %448 = vadd.xlane.f32.xlu1 %v447_v38  ;;  %v2614_v45 = vadd.f32 %v2118_v35, %v2480_v18  ;;  %v456_v50 = vsel %vm377_vm2, %v2606_v41, 0.0 }
 0x10d   :  { %v2609_v42 = vadd.f32 %v2480_v18, %v349_v40  ;;  %v450_v43 = vsel %vm377_vm2, %v2601_v34, 0.0 }
 0x10e   :  { %451 = vadd.xlane.f32.xlu0 %v450_v43  ;;  %v459_v55 = vsel %vm377_vm2, %v2614_v45, 0.0 }
 0x10f   :  { %v453_v46 = vsel %vm377_vm2, %v2609_v42, 0.0 }
 0x110   :  { %454 = vadd.xlane.f32.xlu1 %v453_v46 }
 0x111   :  { %v2121_v47 = vpop.f32.mrb[28].mxu0 }
 0x112   :  { %v362_v52 = vpop.f32.mrb[29].mxu0  ;;  %457 = vadd.xlane.f32.xlu0 %v456_v50  ;;  %v2626_v58 = vadd.f32 %v2121_v47, %v2480_v18 }
 0x113   :  { %v2621_v53 = vadd.f32 %v2480_v18, %v362_v52  ;;  %v2122_v54 = vpop.f32.mrb[30].mxu0 }
 0x114   :  { %v365_v57 = vpop.f32.mrb[31].mxu0  ;;  %460 = vadd.xlane.f32.xlu1 %v459_v55  ;;  %v2634_v0 = vadd.f32 %v2122_v54, %v2480_v18  ;;  %v468_v2 = vsel %vm377_vm2, %v2626_v58, 0.0 }
 0x115   :  { %v2629_v59 = vadd.f32 %v2480_v18, %v365_v57  ;;  %v462_v62 = vsel %vm377_vm2, %v2621_v53, 0.0 }
 0x116   :  { %463 = vadd.xlane.f32.xlu0 %v462_v62  ;;  %v471_v3 = vsel %vm377_vm2, %v2634_v0, 0.0 }
 0x117   :  { %v465_v1 = vsel %vm377_vm2, %v2629_v59, 0.0 }
 0x118   :  { %466 = vadd.xlane.f32.xlu1 %v465_v1 }
 0x11a   :  { %469 = vadd.xlane.f32.xlu0 %v468_v2 }
 0x11c   :  { %472 = vadd.xlane.f32.xlu1 %v471_v3 }
 0x16a   :  { %v386_v5 = vpop.xlane.xlu1 %385 }
 0x16b   :  { %v477_v6 = vmul.f32 0.015625, %v386_v5  ;;  %v380_v7 = vpop.xlane.xlu0 %379 }
 0x16c   :  { %v475_v10 = vmul.f32 0.015625, %v380_v7 }
 0x16d   :  { %v2643_v12 = vsub.f32 %v2483_v20, %v477_v6 }
 0x16e   :  { %v2646_v18 = vsub.f32 %v2486_v22, %v475_v10  ;;  %v389_v13 = vpop.xlane.xlu1 %388 }
 0x16f   :  { %v478_v14 = vmul.f32 0.015625, %v389_v13  ;;  %v383_v15 = vpop.xlane.xlu0 %382  ;;  %v541_v20 = vmul.f32 %v2643_v12, %v2643_v12 }
 0x170   :  { %v476_v17 = vmul.f32 0.015625, %v383_v15  ;;  %v539_v19 = vmul.f32 %v2646_v18, %v2646_v18 }
 0x171   :  { %v2651_v21 = vsub.f32 %v2489_v24, %v478_v14  ;;  %v577_v38 = vsel %vm377_vm2, %v541_v20, 0.0 }
 0x172   :  { %v2654_v26 = vsub.f32 %v2494_v27, %v476_v17  ;;  %v571_v29 = vsel %vm377_vm2, %v539_v19, 0.0 }
 0x173   :  { %572 = vadd.xlane.f32.xlu0 %v571_v29  ;;  %v392_v22 = vpop.xlane.xlu0 %391  ;;  %v542_v35 = vmul.f32 %v2651_v21, %v2651_v21 }
 0x174   :  { %v479_v30 = vmul.f32 0.015625, %v392_v22  ;;  %v540_v31 = vmul.f32 %v2654_v26, %v2654_v26 }
 0x175   :  { %v395_v32 = vpop.xlane.xlu1 %394  ;;  %v580_v54 = vsel %vm377_vm2, %v542_v35, 0.0 }
 0x176   :  { %v2664_v24 = vsub.f32 %v2503_v33, %v479_v30  ;;  %v480_v27 = vmul.f32 0.015625, %v395_v32  ;;  %v574_v40 = vsel %vm377_vm2, %v540_v31, 0.0 }
 0x177   :  { %578 = vadd.xlane.f32.xlu0 %v577_v38  ;;  %575 = vadd.xlane.f32.xlu1 %v574_v40  ;;  %v398_v43 = vpop.xlane.xlu0 %397 }
 0x178   :  { %v2669_v46 = vsub.f32 %v2509_v37, %v480_v27  ;;  %v481_v47 = vmul.f32 0.015625, %v398_v43  ;;  %v543_v50 = vmul.f32 %v2664_v24, %v2664_v24 }
 0x179   :  { %v401_v52 = vpop.xlane.xlu1 %400 }
 0x17a   :  { %v2675_v33 = vsub.f32 %v2506_v36, %v481_v47  ;;  %v482_v55 = vmul.f32 0.015625, %v401_v52  ;;  %v583_v57 = vsel %vm377_vm2, %v543_v50, 0.0  ;;  %v544_v62 = vmul.f32 %v2669_v46, %v2669_v46 }
 0x17b   :  { %581 = vadd.xlane.f32.xlu1 %v580_v54  ;;  %584 = vadd.xlane.f32.xlu0 %v583_v57  ;;  %v404_v37 = vpop.xlane.xlu0 %403 }
 0x17c   :  { %v2681_v1 = vsub.f32 %v2514_v39, %v482_v55  ;;  %v483_v2 = vmul.f32 0.015625, %v404_v37  ;;  %v545_v3 = vmul.f32 %v2675_v33, %v2675_v33  ;;  %v586_v36 = vsel %vm377_vm2, %v544_v62, 0.0 }
 0x17d   :  { %v407_v5 = vpop.xlane.xlu1 %406 }
 0x17e   :  { %v2687_v6 = vsub.f32 %v2521_v44, %v483_v2  ;;  %v484_v7 = vmul.f32 0.015625, %v407_v5  ;;  %v589_v10 = vsel %vm377_vm2, %v545_v3, 0.0  ;;  %v546_v13 = vmul.f32 %v2681_v1, %v2681_v1 }
 0x17f   :  { %587 = vadd.xlane.f32.xlu1 %v586_v36  ;;  %590 = vadd.xlane.f32.xlu0 %v589_v10  ;;  %v410_v39 = vpop.xlane.xlu0 %409 }
 0x180   :  { %v2693_v14 = vsub.f32 %v2529_v49, %v484_v7  ;;  %v485_v15 = vmul.f32 0.015625, %v410_v39  ;;  %v547_v17 = vmul.f32 %v2687_v6, %v2687_v6  ;;  %v592_v44 = vsel %vm377_vm2, %v546_v13, 0.0 }
 0x181   :  { %v413_v19 = vpop.xlane.xlu1 %412 }
 0x182   :  { %v2699_v29 = vsub.f32 %v2526_v48, %v485_v15  ;;  %v486_v20 = vmul.f32 0.015625, %v413_v19  ;;  %v595_v22 = vsel %vm377_vm2, %v547_v17, 0.0  ;;  %v548_v30 = vmul.f32 %v2693_v14, %v2693_v14  ;;  %v2266_v17 = vld [vmem:[%s3387_s5] sm:$0xff]  }
 0x183   :  { %593 = vadd.xlane.f32.xlu1 %v592_v44  ;;  %596 = vadd.xlane.f32.xlu0 %v595_v22  ;;  %v416_v49 = vpop.xlane.xlu0 %415 }
 0x184   :  { %v2705_v31 = vsub.f32 %v2534_v51, %v486_v20  ;;  %v487_v32 = vmul.f32 0.015625, %v416_v49  ;;  %v549_v35 = vmul.f32 %v2699_v29, %v2699_v29  ;;  %v598_v48 = vsel %vm377_vm2, %v548_v30, 0.0  ;;  %2123 = vmatprep.subr.bf16.mxu1 %v2266_v17 }
 0x185   :  { %v419_v27 = vpop.xlane.xlu1 %418  ;;  %2124 = vmatpush3.bf16.msra.mxu1 %v2266_v17 }
 0x186   :  { %v2711_v38 = vsub.f32 %v2541_v56, %v487_v32  ;;  %v488_v40 = vmul.f32 0.015625, %v419_v27  ;;  %v601_v43 = vsel %vm377_vm2, %v549_v35, 0.0  ;;  %v550_v47 = vmul.f32 %v2705_v31, %v2705_v31  ;;  %v2267_v27 = vld [vmem:[%s3387_s5 + $0x8] sm:$0xff]  }
 0x187   :  { %599 = vadd.xlane.f32.xlu1 %v598_v48  ;;  %602 = vadd.xlane.f32.xlu0 %v601_v43  ;;  %v422_v51 = vpop.xlane.xlu0 %421 }
 0x188   :  { %v2717_v50 = vsub.f32 %v2549_v61, %v488_v40  ;;  %v489_v52 = vmul.f32 0.015625, %v422_v51  ;;  %v551_v54 = vmul.f32 %v2711_v38, %v2711_v38  ;;  %v604_v56 = vsel %vm377_vm2, %v550_v47, 0.0  ;;  %2125 = vmatprep.subr.bf16.mxu1 %v2267_v27 }
 0x189   :  { %v425_v55 = vpop.xlane.xlu1 %424  ;;  %2126 = vmatpush3.bf16.msra.mxu1 %v2267_v27 }
 0x18a   :  { %v2723_v57 = vsub.f32 %v2546_v60, %v489_v52  ;;  %v490_v62 = vmul.f32 0.015625, %v425_v55  ;;  %v607_v37 = vsel %vm377_vm2, %v551_v54, 0.0  ;;  %v552_v2 = vmul.f32 %v2717_v50, %v2717_v50 }
 0x18b   :  { %605 = vadd.xlane.f32.xlu1 %v604_v56  ;;  %608 = vadd.xlane.f32.xlu0 %v607_v37  ;;  %v428_v61 = vpop.xlane.xlu0 %427  ;;  %v2268_v56 = vld [vmem:[%s3387_s5 + $0x10] sm:$0xff]  }
 0x18c   :  { %v2729_v3 = vsub.f32 %v2554_v63, %v490_v62  ;;  %v491_v5 = vmul.f32 0.015625, %v428_v61  ;;  %v553_v36 = vmul.f32 %v2723_v57, %v2723_v57  ;;  %v610_v60 = vsel %vm377_vm2, %v552_v2, 0.0  ;;  %2127 = vmatprep.subr.bf16.mxu1 %v2268_v56 }
 0x18d   :  { %v431_v7 = vpop.xlane.xlu1 %430  ;;  %2128 = vmatpush3.bf16.msra.mxu1 %v2268_v56 }
 0x18e   :  { %v2735_v10 = vsub.f32 %v2561_v4, %v491_v5  ;;  %v492_v13 = vmul.f32 0.015625, %v431_v7  ;;  %v613_v39 = vsel %vm377_vm2, %v553_v36, 0.0  ;;  %v554_v15 = vmul.f32 %v2729_v3, %v2729_v3 }
 0x18f   :  { %611 = vadd.xlane.f32.xlu1 %v610_v60  ;;  %614 = vadd.xlane.f32.xlu0 %v613_v39  ;;  %v434_v63 = vpop.xlane.xlu0 %433 }
 0x190   :  { %v2744_v19 = vsub.f32 %v2569_v9, %v492_v13  ;;  %v493_v44 = vmul.f32 0.015625, %v434_v63  ;;  %v616_v4 = vsel %vm377_vm2, %v554_v15, 0.0  ;;  %v555_v20 = vmul.f32 %v2735_v10, %v2735_v10  ;;  %v2269_v13 = vld [vmem:[%s3387_s5 + $0x18] sm:$0xff]  }
 0x191   :  { %v437_v22 = vpop.xlane.xlu1 %436  ;;  %2129 = vmatprep.subr.bf16.mxu1 %v2269_v13 }
 0x192   :  { %v2750_v30 = vsub.f32 %v2566_v8, %v493_v44  ;;  %v494_v49 = vmul.f32 0.015625, %v437_v22  ;;  %v619_v32 = vsel %vm377_vm2, %v555_v20, 0.0  ;;  %v556_v35 = vmul.f32 %v2744_v19, %v2744_v19  ;;  %2130 = vmatpush3.bf16.msra.mxu1 %v2269_v13 }
 0x193   :  { %617 = vadd.xlane.f32.xlu1 %v616_v4  ;;  %620 = vadd.xlane.f32.xlu0 %v619_v32  ;;  %v440_v9 = vpop.xlane.xlu0 %439 }
 0x194   :  { %v2759_v48 = vsub.f32 %v2574_v11, %v494_v49  ;;  %v495_v40 = vmul.f32 0.015625, %v440_v9  ;;  %v557_v8 = vmul.f32 %v2750_v30, %v2750_v30  ;;  %v622_v47 = vsel %vm377_vm2, %v556_v35, 0.0 }
 0x195   :  { %v443_v43 = vpop.xlane.xlu1 %442 }
 0x196   :  { %v2765_v51 = vsub.f32 %v2581_v16, %v495_v40  ;;  %v496_v52 = vmul.f32 0.015625, %v443_v43  ;;  %v625_v54 = vsel %vm377_vm2, %v557_v8, 0.0  ;;  %v558_v55 = vmul.f32 %v2759_v48, %v2759_v48 }
 0x197   :  { %623 = vadd.xlane.f32.xlu1 %v622_v47  ;;  %626 = vadd.xlane.f32.xlu0 %v625_v54  ;;  %v446_v11 = vpop.xlane.xlu0 %445 }
 0x198   :  { %v2774_v62 = vsub.f32 %v2589_v25, %v496_v52  ;;  %v497_v37 = vmul.f32 0.015625, %v446_v11  ;;  %v559_v16 = vmul.f32 %v2765_v51, %v2765_v51  ;;  %v628_v61 = vsel %vm377_vm2, %v558_v55, 0.0 }
 0x199   :  { %v449_v2 = vpop.xlane.xlu1 %448 }
 0x19a   :  { %v2780_v5 = vsub.f32 %v2586_v23, %v497_v37  ;;  %v498_v36 = vmul.f32 0.015625, %v449_v2  ;;  %v631_v7 = vsel %vm377_vm2, %v559_v16, 0.0  ;;  %v560_v60 = vmul.f32 %v2774_v62, %v2774_v62 }
 0x19b   :  { %629 = vadd.xlane.f32.xlu1 %v628_v61  ;;  %632 = vadd.xlane.f32.xlu0 %v631_v7  ;;  %v452_v25 = vpop.xlane.xlu0 %451 }
 0x19c   :  { %v2789_v39 = vsub.f32 %v2594_v28, %v498_v36  ;;  %v499_v15 = vmul.f32 0.015625, %v452_v25  ;;  %v561_v23 = vmul.f32 %v2780_v5, %v2780_v5  ;;  %v634_v17 = vsel %vm377_vm2, %v560_v60, 0.0 }
 0x19d   :  { %v455_v63 = vpop.xlane.xlu1 %454 }
 0x19e   :  { %v2795_v44 = vsub.f32 %v2601_v34, %v499_v15  ;;  %v500_v4 = vmul.f32 0.015625, %v455_v63  ;;  %v637_v20 = vsel %vm377_vm2, %v561_v23, 0.0  ;;  %v562_v22 = vmul.f32 %v2789_v39, %v2789_v39 }
 0x19f   :  { %635 = vadd.xlane.f32.xlu1 %v634_v17  ;;  %638 = vadd.xlane.f32.xlu0 %v637_v20  ;;  %v458_v28 = vpop.xlane.xlu0 %457  ;;  %v2271_v20 = vld [vmem:[%s3388_s7 + $0x8] sm:$0xff]  }
 0x1a0   :  { %v2801_v49 = vsub.f32 %v2609_v42, %v500_v4  ;;  %v501_v32 = vmul.f32 0.015625, %v458_v28  ;;  %v563_v35 = vmul.f32 %v2795_v44, %v2795_v44  ;;  %v640_v34 = vsel %vm377_vm2, %v562_v22, 0.0  ;;  %v2272_v22 = vld [vmem:[%s3388_s7 + $0x10] sm:$0xff]   ;;  %v2273_v28 = vld [vmem:[%s3388_s7 + $0x18] sm:$0xff]  }
 0x1a1   :  { %v461_v9 = vpop.xlane.xlu1 %460 }
 0x1a2   :  { %v2807_v27 = vsub.f32 %v2606_v41, %v501_v32  ;;  %v502_v40 = vmul.f32 0.015625, %v461_v9  ;;  %v643_v8 = vsel %vm377_vm2, %v563_v35, 0.0  ;;  %v564_v43 = vmul.f32 %v2801_v49, %v2801_v49  ;;  %v2274_v32 = vld [vmem:[%s3388_s7 + $0x20] sm:$0xff]   ;;  %v2275_v35 = vld [vmem:[%s3388_s7 + $0x28] sm:$0xff]   ;;  %v2276_v9 = vld [vmem:[%s3388_s7 + $0x30] sm:$0xff]  }
 0x1a3   :  { %641 = vadd.xlane.f32.xlu1 %v640_v34  ;;  %644 = vadd.xlane.f32.xlu0 %v643_v8  ;;  %v464_v42 = vpop.xlane.xlu0 %463 }
 0x1a4   :  { %v2813_v47 = vsub.f32 %v2614_v45, %v502_v40  ;;  %v503_v52 = vmul.f32 0.015625, %v464_v42  ;;  %v565_v54 = vmul.f32 %v2807_v27, %v2807_v27  ;;  %v646_v41 = vsel %vm377_vm2, %v564_v43, 0.0 }
 0x1a5   :  { %v467_v55 = vpop.xlane.xlu1 %466 }
 0x1a6   :  { %v2819_v11 = vsub.f32 %v2621_v53, %v503_v52  ;;  %v504_v56 = vmul.f32 0.015625, %v467_v55  ;;  %v649_v37 = vsel %vm377_vm2, %v565_v54, 0.0  ;;  %v566_v16 = vmul.f32 %v2813_v47, %v2813_v47 }
 0x1a7   :  { %647 = vadd.xlane.f32.xlu1 %v646_v41  ;;  %650 = vadd.xlane.f32.xlu0 %v649_v37  ;;  %v470_v45 = vpop.xlane.xlu0 %469 }
 0x1a8   :  { %v2825_v2 = vsub.f32 %v2629_v59, %v504_v56  ;;  %v505_v61 = vmul.f32 0.015625, %v470_v45  ;;  %v567_v36 = vmul.f32 %v2819_v11, %v2819_v11  ;;  %v652_v53 = vsel %vm377_vm2, %v566_v16, 0.0 }
 0x1a9   :  { %v473_v7 = vpop.xlane.xlu1 %472 }
 0x1aa   :  { %v2831_v60 = vsub.f32 %v2626_v58, %v505_v61  ;;  %v506_v25 = vmul.f32 0.015625, %v473_v7  ;;  %v655_v13 = vsel %vm377_vm2, %v567_v36, 0.0  ;;  %v568_v15 = vmul.f32 %v2825_v2, %v2825_v2 }
 0x1ab   :  { %653 = vadd.xlane.f32.xlu1 %v652_v53  ;;  %656 = vadd.xlane.f32.xlu0 %v655_v13 }
 0x1ac   :  { %v2837_v59 = vsub.f32 %v2634_v0, %v506_v25  ;;  %v569_v23 = vmul.f32 %v2831_v60, %v2831_v60  ;;  %v658_v63 = vsel %vm377_vm2, %v568_v15, 0.0  ;;  %v2270_v0 = vld [vmem:[%s3388_s7] sm:$0xff]  }
 0x1ad   :  { %2163 = vmatprep.subr.bf16.mxu0 %v2270_v0 }
 0x1ae   :  { %v661_v17 = vsel %vm377_vm2, %v569_v23, 0.0  ;;  %v570_v58 = vmul.f32 %v2837_v59, %v2837_v59  ;;  %2164 = vmatpush3.bf16.msra.mxu0 %v2270_v0 }
 0x1af   :  { %659 = vadd.xlane.f32.xlu1 %v658_v63  ;;  %662 = vadd.xlane.f32.xlu0 %v661_v17 }
 0x1b0   :  { %v664_v4 = vsel %vm377_vm2, %v570_v58, 0.0  ;;  %2165 = vmatprep.subr.bf16.mxu0 %v2271_v20 }
 0x1b2   :  { %2166 = vmatpush3.bf16.msra.mxu0 %v2271_v20 }
 0x1b3   :  { %665 = vadd.xlane.f32.xlu1 %v664_v4  ;;  %2167 = vmatprep.subr.bf16.mxu0 %v2272_v22 }
 0x1b6   :  { %2168 = vmatpush3.bf16.msra.mxu0 %v2272_v22  ;;  %v2871_v22 = vld [vmem:[%s3389_s3] ss:$0 sm:$0xff] }
 0x1b7   :  { %2169 = vmatprep.subr.bf16.mxu0 %v2273_v28 }
 0x1ba   :  { %2170 = vmatpush3.bf16.msra.mxu0 %v2273_v28 }
 0x1bb   :  { %2171 = vmatprep.subr.bf16.mxu0 %v2274_v32 }
 0x1be   :  { %2172 = vmatpush3.bf16.msra.mxu0 %v2274_v32 }
 0x1bf   :  { %2173 = vmatprep.subr.bf16.mxu0 %v2275_v35 }
 0x1c2   :  { %2174 = vmatpush3.bf16.msra.mxu0 %v2275_v35 }
 0x1c3   :  { %2175 = vmatprep.subr.bf16.mxu0 %v2276_v9 }
 0x1c6   :  { %2176 = vmatpush3.bf16.msra.mxu0 %v2276_v9 }
 0x200   :  { %v573_v34 = vpop.xlane.xlu0 %572 }
 0x201   :  { %v667_v40 = vmul.f32 0.015625, %v573_v34 }
 0x203   :  { %v699_v8 = vadd.f32 1e-05, %v667_v40 }
 0x204   :  { %v576_v43 = vpop.xlane.xlu1 %575  ;;  %v579_v42 = vpop.xlane.xlu0 %578 }
 0x205   :  { %2281 = vrsqrt.f32 %v699_v8  ;;  %v668_v52 = vmul.f32 0.015625, %v576_v43  ;;  %v669_v54 = vmul.f32 0.015625, %v579_v42 }
 0x207   :  { %v700_v55 = vadd.f32 1e-05, %v668_v52  ;;  %v701_v41 = vadd.f32 1e-05, %v669_v54  ;;  %v2879_v54 = vld [vmem:[%s3390_s4] ss:$0 sm:$0xff] }
 0x208   :  { %v582_v56 = vpop.xlane.xlu1 %581  ;;  %v585_v37 = vpop.xlane.xlu0 %584 }
 0x209   :  { %2283 = vrsqrt.f32 %v700_v55  ;;  %v670_v16 = vmul.f32 0.015625, %v582_v56  ;;  %v671_v45 = vmul.f32 0.015625, %v585_v37 }
 0x20a   :  { %2285 = vrsqrt.f32 %v701_v41 }
 0x20b   :  { %v702_v61 = vadd.f32 1e-05, %v670_v16  ;;  %v703_v36 = vadd.f32 1e-05, %v671_v45 }
 0x20c   :  { %v588_v7 = vpop.xlane.xlu1 %587  ;;  %v591_v53 = vpop.xlane.xlu0 %590 }
 0x20d   :  { %2287 = vrsqrt.f32 %v702_v61  ;;  %v672_v25 = vmul.f32 0.015625, %v588_v7  ;;  %v673_v13 = vmul.f32 0.015625, %v591_v53 }
 0x20e   :  { %2289 = vrsqrt.f32 %v703_v36 }
 0x20f   :  { %v2282_v15 = vpop.eup %2281  ;;  %v704_v23 = vadd.f32 1e-05, %v672_v25  ;;  %v705_v63 = vadd.f32 1e-05, %v673_v13 }
 0x210   :  { %v594_v17 = vpop.xlane.xlu1 %593  ;;  %v597_v58 = vpop.xlane.xlu0 %596  ;;  %v763_v4 = vmul.f32 %v2282_v15, %v2646_v18 }
 0x211   :  { %2291 = vrsqrt.f32 %v704_v23  ;;  %v674_v0 = vmul.f32 0.015625, %v594_v17  ;;  %v675_v20 = vmul.f32 0.015625, %v597_v58 }
 0x212   :  { %2293 = vrsqrt.f32 %v705_v63  ;;  %v802_v43 = vmul.f32 %v2871_v22, %v763_v4 }
 0x213   :  { %v2284_v28 = vpop.eup %2283  ;;  %v706_v32 = vadd.f32 1e-05, %v674_v0  ;;  %v707_v35 = vadd.f32 1e-05, %v675_v20 }
 0x214   :  { %v2286_v9 = vpop.eup %2285  ;;  %v600_v34 = vpop.xlane.xlu1 %599  ;;  %v764_v8 = vmul.f32 %v2284_v28, %v2654_v26 }
 0x215   :  { %v603_v40 = vpop.xlane.xlu0 %602  ;;  %v765_v18 = vmul.f32 %v2286_v9, %v2643_v12  ;;  %2295 = vrsqrt.f32 %v706_v32  ;;  %v676_v42 = vmul.f32 0.015625, %v600_v34  ;;  %v841_v12 = vadd.f32 %v2879_v54, %v802_v43 }
 0x216   :  { %v677_v52 = vmul.f32 0.015625, %v603_v40  ;;  %2297 = vrsqrt.f32 %v707_v35  ;;  %v803_v55 = vmul.f32 %v2871_v22, %v764_v8 }
 0x217   :  { %v2288_v41 = vpop.eup %2287  ;;  %v708_v56 = vadd.f32 1e-05, %v676_v42  ;;  %v804_v7 = vmul.f32 %v2871_v22, %v765_v18 }
 0x218   :  { %v709_v37 = vadd.f32 1e-05, %v677_v52  ;;  %v2290_v16 = vpop.eup %2289  ;;  %v766_v26 = vmul.f32 %v2288_v41, %v2651_v21  ;;  %v606_v45 = vpop.xlane.xlu1 %605  ;;  %v842_v36 = vadd.f32 %v2879_v54, %v803_v55 }
 0x219   :  { %v609_v61 = vpop.xlane.xlu0 %608  ;;  %v767_v53 = vmul.f32 %v2290_v16, %v2664_v24  ;;  %2299 = vrsqrt.f32 %v708_v56  ;;  %v678_v25 = vmul.f32 0.015625, %v606_v45  ;;  %v843_v28 = vadd.f32 %v2879_v54, %v804_v7 }
 0x21a   :  { %v679_v13 = vmul.f32 0.015625, %v609_v61  ;;  %2301 = vrsqrt.f32 %v709_v37  ;;  %v873_v15 = vpack.c.bf16 %v842_v36, %v841_v12  ;;  %v805_v23 = vmul.f32 %v2871_v22, %v766_v26 }
 0x21b   :  { %v2292_v63 = vpop.eup %2291  ;;  %v710_v17 = vadd.f32 1e-05, %v678_v25  ;;  %v806_v32 = vmul.f32 %v2871_v22, %v767_v53 }
 0x21c   :  { %v711_v21 = vadd.f32 1e-05, %v679_v13  ;;  %v2294_v58 = vpop.eup %2293  ;;  %v768_v4 = vmul.f32 %v2292_v63, %v2669_v46  ;;  %v612_v0 = vpop.xlane.xlu1 %611  ;;  %2131 = vmatprep.mubr.msk.bf16.mxu1 %vm377_vm2, %v873_v15  ;;  %v844_v24 = vadd.f32 %v2879_v54, %v805_v23 }
 0x21d   :  { %v615_v20 = vpop.xlane.xlu0 %614  ;;  %v769_v35 = vmul.f32 %v2294_v58, %v2675_v33  ;;  %2303 = vrsqrt.f32 %v710_v17  ;;  %v680_v9 = vmul.f32 0.015625, %v612_v0  ;;  %v845_v56 = vadd.f32 %v2879_v54, %v806_v32 }
 0x21e   :  { %v681_v34 = vmul.f32 0.015625, %v615_v20  ;;  %2305 = vrsqrt.f32 %v711_v21  ;;  %v874_v40 = vpack.c.bf16 %v844_v24, %v843_v28  ;;  %v807_v8 = vmul.f32 %v2871_v22, %v768_v4 }
 0x21f   :  { %v2296_v46 = vpop.eup %2295  ;;  %v712_v43 = vadd.f32 1e-05, %v680_v9  ;;  %v808_v37 = vmul.f32 %v2871_v22, %v769_v35 }
 0x220   :  { %v713_v18 = vadd.f32 1e-05, %v681_v34  ;;  %v2298_v42 = vpop.eup %2297  ;;  %v770_v52 = vmul.f32 %v2296_v46, %v2681_v1  ;;  %v618_v55 = vpop.xlane.xlu1 %617  ;;  %2132 = vmatmul.mubr.msk.bf16.vlgmr.msra.gmra.mrb[0].mxu1 %vm377_vm2, %v874_v40  ;;  %v846_v33 = vadd.f32 %v2879_v54, %v807_v8 }
 0x221   :  { %v621_v41 = vpop.xlane.xlu0 %620  ;;  %v771_v16 = vmul.f32 %v2298_v42, %v2687_v6  ;;  %2307 = vrsqrt.f32 %v712_v43  ;;  %v682_v26 = vmul.f32 0.015625, %v618_v55  ;;  %v847_v23 = vadd.f32 %v2879_v54, %v808_v37 }
 0x222   :  { %v683_v45 = vmul.f32 0.015625, %v621_v41  ;;  %2309 = vrsqrt.f32 %v713_v18  ;;  %v875_v61 = vpack.c.bf16 %v846_v33, %v845_v56  ;;  %v809_v12 = vmul.f32 %v2871_v22, %v770_v52 }
 0x223   :  { %v2300_v1 = vpop.eup %2299  ;;  %v714_v36 = vadd.f32 1e-05, %v682_v26  ;;  %v810_v63 = vmul.f32 %v2871_v22, %v771_v16 }
 0x224   :  { %v715_v7 = vadd.f32 1e-05, %v683_v45  ;;  %v2302_v53 = vpop.eup %2301  ;;  %v772_v25 = vmul.f32 %v2300_v1, %v2693_v14  ;;  %v624_v13 = vpop.xlane.xlu1 %623  ;;  %2135 = vmatprep.mubr.msk.bf16.mxu1 %vm377_vm2, %v875_v61  ;;  %v848_v6 = vadd.f32 %v2879_v54, %v809_v12 }
 0x225   :  { %v627_v15 = vpop.xlane.xlu0 %626  ;;  %v773_v17 = vmul.f32 %v2302_v53, %v2699_v29  ;;  %2311 = vrsqrt.f32 %v714_v36  ;;  %v684_v21 = vmul.f32 0.015625, %v624_v13  ;;  %v849_v34 = vadd.f32 %v2879_v54, %v810_v63 }
 0x226   :  { %v685_v58 = vmul.f32 0.015625, %v627_v15  ;;  %2313 = vrsqrt.f32 %v715_v7  ;;  %v876_v4 = vpack.c.bf16 %v848_v6, %v847_v23  ;;  %v811_v0 = vmul.f32 %v2871_v22, %v772_v25 }
 0x227   :  { %v2304_v14 = vpop.eup %2303  ;;  %v716_v20 = vadd.f32 1e-05, %v684_v21  ;;  %v812_v40 = vmul.f32 %v2871_v22, %v773_v17 }
 0x228   :  { %v717_v28 = vadd.f32 1e-05, %v685_v58  ;;  %v2306_v24 = vpop.eup %2305  ;;  %v774_v32 = vmul.f32 %v2304_v14, %v2705_v31  ;;  %v630_v35 = vpop.xlane.xlu1 %629  ;;  %2136 = vmatmul.mubr.msk.bf16.gmra.mrb[4].mxu1 %vm377_vm2, %v876_v4  ;;  %v850_v29 = vadd.f32 %v2879_v54, %v811_v0 }
 0x229   :  { %v633_v9 = vpop.xlane.xlu0 %632  ;;  %v775_v8 = vmul.f32 %v2306_v24, %v2711_v38  ;;  %2315 = vrsqrt.f32 %v716_v20  ;;  %v686_v46 = vmul.f32 0.015625, %v630_v35  ;;  %v851_v16 = vadd.f32 %v2879_v54, %v812_v40 }
 0x22a   :  { %v687_v43 = vmul.f32 0.015625, %v633_v9  ;;  %2317 = vrsqrt.f32 %v717_v28  ;;  %v877_v18 = vpack.c.bf16 %v850_v29, %v849_v34  ;;  %v813_v42 = vmul.f32 %v2871_v22, %v774_v32 }
 0x22b   :  { %v2308_v31 = vpop.eup %2307  ;;  %v718_v52 = vadd.f32 1e-05, %v686_v46  ;;  %v814_v26 = vmul.f32 %v2871_v22, %v775_v8 }
 0x22c   :  { %v719_v55 = vadd.f32 1e-05, %v687_v43  ;;  %v2310_v41 = vpop.eup %2309  ;;  %v776_v56 = vmul.f32 %v2308_v31, %v2717_v50  ;;  %v636_v33 = vpop.xlane.xlu1 %635  ;;  %2139 = vmatprep.mubr.msk.bf16.mxu1 %vm377_vm2, %v877_v18  ;;  %v852_v38 = vadd.f32 %v2879_v54, %v813_v42 }
 0x22d   :  { %v639_v37 = vpop.xlane.xlu0 %638  ;;  %v777_v45 = vmul.f32 %v2310_v41, %v2723_v57  ;;  %2319 = vrsqrt.f32 %v718_v52  ;;  %v688_v61 = vmul.f32 0.015625, %v636_v33  ;;  %v853_v6 = vadd.f32 %v2879_v54, %v814_v26 }
 0x22e   :  { %v689_v12 = vmul.f32 0.015625, %v639_v37  ;;  %2321 = vrsqrt.f32 %v719_v55  ;;  %v878_v1 = vpack.c.bf16 %v852_v38, %v851_v16  ;;  %v815_v36 = vmul.f32 %v2871_v22, %v776_v56 }
 0x22f   :  { %v2312_v50 = vpop.eup %2311  ;;  %v720_v7 = vadd.f32 1e-05, %v688_v61  ;;  %v816_v63 = vmul.f32 %v2871_v22, %v777_v45 }
 0x230   :  { %v721_v53 = vadd.f32 1e-05, %v689_v12  ;;  %v2314_v25 = vpop.eup %2313  ;;  %v778_v13 = vmul.f32 %v2312_v50, %v2729_v3  ;;  %v642_v15 = vpop.xlane.xlu1 %641  ;;  %2140 = vmatmul.mubr.msk.bf16.gmra.mrb[8].mxu1 %vm377_vm2, %v878_v1  ;;  %v854_v57 = vadd.f32 %v2879_v54, %v815_v36 }
 0x231   :  { %v645_v23 = vpop.xlane.xlu0 %644  ;;  %v779_v17 = vmul.f32 %v2314_v25, %v2735_v10  ;;  %2323 = vrsqrt.f32 %v720_v7  ;;  %v690_v21 = vmul.f32 0.015625, %v642_v15  ;;  %v855_v9 = vadd.f32 %v2879_v54, %v816_v63 }
 0x232   :  { %v691_v58 = vmul.f32 0.015625, %v645_v23  ;;  %2325 = vrsqrt.f32 %v721_v53  ;;  %v879_v4 = vpack.c.bf16 %v854_v57, %v853_v6  ;;  %v817_v0 = vmul.f32 %v2871_v22, %v778_v13 }
 0x233   :  { %v2316_v3 = vpop.eup %2315  ;;  %v722_v14 = vadd.f32 1e-05, %v690_v21  ;;  %v818_v34 = vmul.f32 %v2871_v22, %v779_v17 }
 0x234   :  { %v723_v20 = vadd.f32 1e-05, %v691_v58  ;;  %v2318_v28 = vpop.eup %2317  ;;  %v780_v24 = vmul.f32 %v2316_v3, %v2744_v19  ;;  %v648_v32 = vpop.xlane.xlu1 %647  ;;  %2143 = vmatprep.mubr.msk.bf16.mxu1 %vm377_vm2, %v879_v4  ;;  %v856_v10 = vadd.f32 %v2879_v54, %v817_v0 }
 0x235   :  { %v651_v35 = vpop.xlane.xlu0 %650  ;;  %v781_v29 = vmul.f32 %v2318_v28, %v2750_v30  ;;  %2327 = vrsqrt.f32 %v722_v14  ;;  %v692_v40 = vmul.f32 0.015625, %v648_v32  ;;  %v857_v56 = vadd.f32 %v2879_v54, %v818_v34 }
 0x236   :  { %v693_v8 = vmul.f32 0.015625, %v651_v35  ;;  %2329 = vrsqrt.f32 %v723_v20  ;;  %v880_v46 = vpack.c.bf16 %v856_v10, %v855_v9  ;;  %v819_v43 = vmul.f32 %v2871_v22, %v780_v24 }
 0x237   :  { %v2320_v19 = vpop.eup %2319  ;;  %v724_v18 = vadd.f32 1e-05, %v692_v40  ;;  %v820_v33 = vmul.f32 %v2871_v22, %v781_v29 }
 0x238   :  { %v725_v42 = vadd.f32 1e-05, %v693_v8  ;;  %v2322_v31 = vpop.eup %2321  ;;  %v782_v52 = vmul.f32 %v2320_v19, %v2759_v48  ;;  %v654_v55 = vpop.xlane.xlu1 %653  ;;  %2144 = vmatmul.mubr.msk.bf16.gmra.mrb[12].mxu1 %vm377_vm2, %v880_v46  ;;  %v858_v30 = vadd.f32 %v2879_v54, %v819_v43 }
 0x239   :  { %v657_v41 = vpop.xlane.xlu0 %656  ;;  %v783_v37 = vmul.f32 %v2322_v31, %v2765_v51  ;;  %2331 = vrsqrt.f32 %v724_v18  ;;  %v694_v16 = vmul.f32 0.015625, %v654_v55  ;;  %v859_v53 = vadd.f32 %v2879_v54, %v820_v33 }
 0x23a   :  { %v695_v38 = vmul.f32 0.015625, %v657_v41  ;;  %2333 = vrsqrt.f32 %v725_v42  ;;  %v881_v26 = vpack.c.bf16 %v858_v30, %v857_v56  ;;  %v821_v45 = vmul.f32 %v2871_v22, %v782_v52 }
 0x23b   :  { %v2324_v48 = vpop.eup %2323  ;;  %v726_v61 = vadd.f32 1e-05, %v694_v16  ;;  %v822_v25 = vmul.f32 %v2871_v22, %v783_v37 }
 0x23c   :  { %v727_v12 = vadd.f32 1e-05, %v695_v38  ;;  %v2326_v1 = vpop.eup %2325  ;;  %v784_v36 = vmul.f32 %v2324_v48, %v2774_v62  ;;  %v660_v50 = vpop.xlane.xlu1 %659  ;;  %2147 = vmatprep.mubr.msk.bf16.mxu1 %vm377_vm2, %v881_v26  ;;  %v860_v51 = vadd.f32 %v2879_v54, %v821_v45 }
 0x23d   :  { %v663_v7 = vpop.xlane.xlu0 %662  ;;  %v785_v13 = vmul.f32 %v2326_v1, %v2780_v5  ;;  %2335 = vrsqrt.f32 %v726_v61  ;;  %v696_v15 = vmul.f32 0.015625, %v660_v50  ;;  %v861_v0 = vadd.f32 %v2879_v54, %v822_v25  ;;  %v2278_v50 = vld [vmem:[%s3391_s9] sm:$0xff]  }
 0x23e   :  { %v697_v23 = vmul.f32 0.015625, %v663_v7  ;;  %2337 = vrsqrt.f32 %v727_v12  ;;  %v882_v6 = vpack.c.bf16 %v860_v51, %v859_v53  ;;  %v823_v57 = vmul.f32 %v2871_v22, %v784_v36  ;;  %2211 = vmatprep.subr.bf16.mxu1 %v2278_v50  ;;  %v3004_v7 = vld [vmem:[%s3392_s6] ss:$0 sm:$0xff] }
 0x23f   :  { %v2328_v62 = vpop.eup %2327  ;;  %v728_v63 = vadd.f32 1e-05, %v696_v15  ;;  %v824_v3 = vmul.f32 %v2871_v22, %v785_v13  ;;  %2212 = vmatpush3.bf16.msra.mxu1 %v2278_v50 }
 0x240   :  { %v729_v17 = vadd.f32 1e-05, %v697_v23  ;;  %v2330_v21 = vpop.eup %2329  ;;  %v786_v58 = vmul.f32 %v2328_v62, %v2789_v39  ;;  %v666_v4 = vpop.xlane.xlu1 %665  ;;  %2148 = vmatmul.mubr.msk.bf16.gmra.mrb[16].mxu1 %vm377_vm2, %v882_v6  ;;  %v862_v5 = vadd.f32 %v2879_v54, %v823_v57 }
 0x241   :  { %v787_v14 = vmul.f32 %v2330_v21, %v2795_v44  ;;  %2339 = vrsqrt.f32 %v728_v63  ;;  %v698_v20 = vmul.f32 0.015625, %v666_v4  ;;  %v863_v10 = vadd.f32 %v2879_v54, %v824_v3 }
 0x242   :  { %2341 = vrsqrt.f32 %v729_v17  ;;  %v883_v28 = vpack.c.bf16 %v862_v5, %v861_v0  ;;  %v825_v24 = vmul.f32 %v2871_v22, %v786_v58 }
 0x243   :  { %v2332_v32 = vpop.eup %2331  ;;  %v730_v35 = vadd.f32 1e-05, %v698_v20  ;;  %v826_v29 = vmul.f32 %v2871_v22, %v787_v14 }
 0x244   :  { %v2334_v39 = vpop.eup %2333  ;;  %v788_v9 = vmul.f32 %v2332_v32, %v2801_v49  ;;  %2151 = vmatprep.mubr.msk.bf16.mxu1 %vm377_vm2, %v883_v28  ;;  %v864_v34 = vadd.f32 %v2879_v54, %v825_v24 }
 0x245   :  { %v789_v44 = vmul.f32 %v2334_v39, %v2807_v27  ;;  %2343 = vrsqrt.f32 %v730_v35  ;;  %v865_v49 = vadd.f32 %v2879_v54, %v826_v29 }
 0x246   :  { %v884_v40 = vpack.c.bf16 %v864_v34, %v863_v10  ;;  %v827_v8 = vmul.f32 %v2871_v22, %v788_v9 }
 0x247   :  { %v2336_v46 = vpop.eup %2335  ;;  %v828_v42 = vmul.f32 %v2871_v22, %v789_v44 }
 0x248   :  { %v2338_v43 = vpop.eup %2337  ;;  %v790_v19 = vmul.f32 %v2336_v46, %v2813_v47  ;;  %2152 = vmatmul.mubr.msk.bf16.gmra.mrb[20].mxu1 %vm377_vm2, %v884_v40  ;;  %v866_v18 = vadd.f32 %v2879_v54, %v827_v8 }
 0x249   :  { %v791_v31 = vmul.f32 %v2338_v43, %v2819_v11  ;;  %v867_v47 = vadd.f32 %v2879_v54, %v828_v42 }
 0x24a   :  { %v885_v52 = vpack.c.bf16 %v866_v18, %v865_v49  ;;  %v829_v27 = vmul.f32 %v2871_v22, %v790_v19 }
 0x24b   :  { %v2340_v55 = vpop.eup %2339  ;;  %v830_v33 = vmul.f32 %v2871_v22, %v791_v31 }
 0x24c   :  { %v2342_v41 = vpop.eup %2341  ;;  %v792_v56 = vmul.f32 %v2340_v55, %v2825_v2  ;;  %2155 = vmatprep.mubr.msk.bf16.mxu1 %vm377_vm2, %v885_v52  ;;  %v868_v30 = vadd.f32 %v2879_v54, %v829_v27 }
 0x24d   :  { %v793_v37 = vmul.f32 %v2342_v41, %v2831_v60  ;;  %v869_v2 = vadd.f32 %v2879_v54, %v830_v33 }
 0x24e   :  { %v886_v16 = vpack.c.bf16 %v868_v30, %v867_v47  ;;  %v831_v11 = vmul.f32 %v2871_v22, %v792_v56 }
 0x24f   :  { %v2344_v38 = vpop.eup %2343  ;;  %v832_v48 = vmul.f32 %v2871_v22, %v793_v37 }
 0x250   :  { %v794_v26 = vmul.f32 %v2344_v38, %v2837_v59  ;;  %2156 = vmatmul.mubr.msk.bf16.gmra.mrb[24].mxu1 %vm377_vm2, %v886_v16  ;;  %v870_v45 = vadd.f32 %v2879_v54, %v831_v11  ;;  %v2277_v59 = vld [vmem:[%s3388_s7 + $0x38] sm:$0xff]  }
 0x251   :  { %v871_v60 = vadd.f32 %v2879_v54, %v832_v48  ;;  %2177 = vmatprep.subr.bf16.mxu0 %v2277_v59 }
 0x252   :  { %v887_v61 = vpack.c.bf16 %v870_v45, %v869_v2  ;;  %v833_v12 = vmul.f32 %v2871_v22, %v794_v26  ;;  %2178 = vmatpush3.bf16.msra.mxu0 %v2277_v59  ;;  %v2279_v22 = vld [vmem:[%s3391_s9 + $0x8] sm:$0xff]  }
 0x253   :  { %2213 = vmatprep.subr.bf16.mxu1 %v2279_v22 }
 0x254   :  { %2159 = vmatprep.mubr.msk.bf16.mxu1 %vm377_vm2, %v887_v61  ;;  %v872_v1 = vadd.f32 %v2879_v54, %v833_v12  ;;  %v2280_v54 = vld [vmem:[%s3391_s9 + $0x10] sm:$0xff]   ;;  %2214 = vmatpush3.bf16.msra.mxu1 %v2279_v22 }
 0x255   :  { %2215 = vmatprep.subr.bf16.mxu1 %v2280_v54 }
 0x256   :  { %v888_v36 = vpack.c.bf16 %v872_v1, %v871_v60 }
 0x258   :  { %2160 = vmatmul.mubr.msk.bf16.gmra.mrb[28].mxu1 %vm377_vm2, %v888_v36 }
 0x259   :  { %2216 = vmatpush3.bf16.msra.mxu1 %v2280_v54 }
 0x2f3   :  { %v2133_v53 = vpop.f32.mrb[0].mxu1 }
 0x2f4   :  { %v1019_v51 = vadd.f32 %v2133_v53, %v3004_v7  ;;  %v1010_v25 = vpop.f32.mrb[1].mxu1 }
 0x2f5   :  { %v1011_v13 = vadd.f32 %v3004_v7, %v1010_v25  ;;  %v2134_v15 = vpop.f32.mrb[2].mxu1 }
 0x2f6   :  { %v1022_v23 = vadd.f32 %v2134_v15, %v3004_v7  ;;  %v1013_v6 = vpop.f32.mrb[3].mxu1  ;;  %v1139_v62 = vmax.f32 %v1019_v51, 0.0 }
 0x2f7   :  { %v1014_v57 = vadd.f32 %v3004_v7, %v1013_v6  ;;  %v1137_v17 = vmax.f32 %v1011_v13, 0.0 }
 0x2f8   :  { %v1140_v63 = vmax.f32 %v1022_v23, 0.0 }
 0x2f9   :  { %v1138_v21 = vmax.f32 %v1014_v57, 0.0 }
 0x2fa   :  { %v1170_v58 = vpack.c.bf16 %v1140_v63, %v1139_v62 }
 0x2fb   :  { %v1169_v4 = vpack.c.bf16 %v1138_v21, %v1137_v17  ;;  %v2137_v0 = vpop.f32.mrb[4].mxu1 }
 0x2fc   :  { %v1035_v5 = vadd.f32 %v2137_v0, %v3004_v7  ;;  %v1026_v3 = vpop.f32.mrb[5].mxu1 }
 0x2fd   :  { %v1027_v14 = vadd.f32 %v3004_v7, %v1026_v3  ;;  %v2138_v20 = vpop.f32.mrb[6].mxu1  ;;  %2179 = vmatprep.mubr.bf16.mxu0 %v1169_v4 }
 0x2fe   :  { %v1038_v28 = vadd.f32 %v2138_v20, %v3004_v7  ;;  %v1029_v24 = vpop.f32.mrb[7].mxu1  ;;  %2180 = vmatmul.mubr.bf16.vlgmr.msra.gmra.mrb[32].mxu0 %v1170_v58  ;;  %v1143_v35 = vmax.f32 %v1035_v5, 0.0 }
 0x2ff   :  { %v1030_v32 = vadd.f32 %v3004_v7, %v1029_v24  ;;  %v1141_v9 = vmax.f32 %v1027_v14, 0.0 }
 0x300   :  { %v1144_v39 = vmax.f32 %v1038_v28, 0.0 }
 0x301   :  { %v1142_v10 = vmax.f32 %v1030_v32, 0.0 }
 0x302   :  { %v1172_v34 = vpack.c.bf16 %v1144_v39, %v1143_v35 }
 0x303   :  { %v1171_v29 = vpack.c.bf16 %v1142_v10, %v1141_v9  ;;  %v2141_v44 = vpop.f32.mrb[8].mxu1 }
 0x304   :  { %v1051_v40 = vadd.f32 %v2141_v44, %v3004_v7  ;;  %v1042_v8 = vpop.f32.mrb[9].mxu1 }
 0x305   :  { %v1043_v46 = vadd.f32 %v3004_v7, %v1042_v8  ;;  %v2142_v43 = vpop.f32.mrb[10].mxu1  ;;  %2183 = vmatprep.mubr.bf16.mxu0 %v1171_v29 }
 0x306   :  { %v1054_v19 = vadd.f32 %v2142_v43, %v3004_v7  ;;  %v1045_v49 = vpop.f32.mrb[11].mxu1  ;;  %2184 = vmatmul.mubr.bf16.gmra.mrb[36].mxu0 %v1172_v34  ;;  %v1147_v42 = vmax.f32 %v1051_v40, 0.0 }
 0x307   :  { %v1046_v18 = vadd.f32 %v3004_v7, %v1045_v49  ;;  %v1145_v52 = vmax.f32 %v1043_v46, 0.0 }
 0x308   :  { %v1148_v31 = vmax.f32 %v1054_v19, 0.0 }
 0x309   :  { %v1146_v27 = vmax.f32 %v1046_v18, 0.0 }
 0x30a   :  { %v1174_v55 = vpack.c.bf16 %v1148_v31, %v1147_v42 }
 0x30b   :  { %v1173_v41 = vpack.c.bf16 %v1146_v27, %v1145_v52  ;;  %v2145_v56 = vpop.f32.mrb[12].mxu1 }
 0x30c   :  { %v1067_v47 = vadd.f32 %v2145_v56, %v3004_v7  ;;  %v1058_v30 = vpop.f32.mrb[13].mxu1 }
 0x30d   :  { %v1059_v33 = vadd.f32 %v3004_v7, %v1058_v30  ;;  %v2146_v37 = vpop.f32.mrb[14].mxu1  ;;  %2187 = vmatprep.mubr.bf16.mxu0 %v1173_v41 }
 0x30e   :  { %v1070_v16 = vadd.f32 %v2146_v37, %v3004_v7  ;;  %v1061_v11 = vpop.f32.mrb[15].mxu1  ;;  %2188 = vmatmul.mubr.bf16.gmra.mrb[40].mxu0 %v1174_v55  ;;  %v1151_v26 = vmax.f32 %v1067_v47, 0.0 }
 0x30f   :  { %v1062_v38 = vadd.f32 %v3004_v7, %v1061_v11  ;;  %v1149_v45 = vmax.f32 %v1059_v33, 0.0 }
 0x310   :  { %v1152_v2 = vmax.f32 %v1070_v16, 0.0 }
 0x311   :  { %v1150_v48 = vmax.f32 %v1062_v38, 0.0  ;;  %v18_v38 = vstv %s3393_s10 }
 0x312   :  { %v1176_v61 = vpack.c.bf16 %v1152_v2, %v1151_v26  ;;  %19 = vst [vmem:[#allocation2] sm:$0x1] %v18_v38  ;;  %v3044_v26 = vld [vmem:[%s3394_s8] ss:$0 sm:$0xff] }
 0x313   :  { %v1175_v12 = vpack.c.bf16 %v1150_v48, %v1149_v45  ;;  %v2149_v60 = vpop.f32.mrb[16].mxu1 }
 0x314   :  { %v1083_v1 = vadd.f32 %v2149_v60, %v3004_v7  ;;  %v1074_v36 = vpop.f32.mrb[17].mxu1 }
 0x315   :  { %v1075_v59 = vadd.f32 %v3004_v7, %v1074_v36  ;;  %v2150_v50 = vpop.f32.mrb[18].mxu1  ;;  %2191 = vmatprep.mubr.bf16.mxu0 %v1175_v12 }
 0x316   :  { %v1086_v22 = vadd.f32 %v2150_v50, %v3004_v7  ;;  %v1077_v54 = vpop.f32.mrb[19].mxu1  ;;  %2192 = vmatmul.mubr.bf16.gmra.mrb[44].mxu0 %v1176_v61  ;;  %v1155_v51 = vmax.f32 %v1083_v1, 0.0 }
 0x317   :  { %v1078_v53 = vadd.f32 %v3004_v7, %v1077_v54  ;;  %v1153_v13 = vmax.f32 %v1075_v59, 0.0 }
 0x318   :  { %v1156_v25 = vmax.f32 %v1086_v22, 0.0 }
 0x319   :  { %v1154_v15 = vmax.f32 %v1078_v53, 0.0 }
 0x31a   :  { %v1178_v23 = vpack.c.bf16 %v1156_v25, %v1155_v51 }
 0x31b   :  { %v1177_v6 = vpack.c.bf16 %v1154_v15, %v1153_v13  ;;  %v2153_v57 = vpop.f32.mrb[20].mxu1 }
 0x31c   :  { %v1099_v62 = vadd.f32 %v2153_v57, %v3004_v7  ;;  %v1090_v63 = vpop.f32.mrb[21].mxu1 }
 0x31d   :  { %v1091_v17 = vadd.f32 %v3004_v7, %v1090_v63  ;;  %v2154_v21 = vpop.f32.mrb[22].mxu1  ;;  %2195 = vmatprep.mubr.bf16.mxu0 %v1177_v6 }
 0x31e   :  { %v1102_v58 = vadd.f32 %v2154_v21, %v3004_v7  ;;  %v1093_v4 = vpop.f32.mrb[23].mxu1  ;;  %2196 = vmatmul.mubr.bf16.gmra.mrb[48].mxu0 %v1178_v23  ;;  %v1159_v5 = vmax.f32 %v1099_v62, 0.0 }
 0x31f   :  { %v1094_v0 = vadd.f32 %v3004_v7, %v1093_v4  ;;  %v1157_v14 = vmax.f32 %v1091_v17, 0.0 }
 0x320   :  { %v1160_v3 = vmax.f32 %v1102_v58, 0.0 }
 0x321   :  { %v1158_v20 = vmax.f32 %v1094_v0, 0.0 }
 0x322   :  { %v1180_v28 = vpack.c.bf16 %v1160_v3, %v1159_v5 }
 0x323   :  { %v1179_v24 = vpack.c.bf16 %v1158_v20, %v1157_v14  ;;  %v2157_v32 = vpop.f32.mrb[24].mxu1 }
 0x324   :  { %v1115_v35 = vadd.f32 %v2157_v32, %v3004_v7  ;;  %v1106_v39 = vpop.f32.mrb[25].mxu1 }
 0x325   :  { %v1107_v9 = vadd.f32 %v3004_v7, %v1106_v39  ;;  %v2158_v10 = vpop.f32.mrb[26].mxu1  ;;  %2199 = vmatprep.mubr.bf16.mxu0 %v1179_v24 }
 0x326   :  { %v1118_v34 = vadd.f32 %v2158_v10, %v3004_v7  ;;  %v1109_v29 = vpop.f32.mrb[27].mxu1  ;;  %2200 = vmatmul.mubr.bf16.gmra.mrb[52].mxu0 %v1180_v28  ;;  %v1163_v40 = vmax.f32 %v1115_v35, 0.0 }
 0x327   :  { %v1110_v44 = vadd.f32 %v3004_v7, %v1109_v29  ;;  %v1161_v46 = vmax.f32 %v1107_v9, 0.0 }
 0x328   :  { %v1164_v8 = vmax.f32 %v1118_v34, 0.0 }
 0x329   :  { %v1162_v43 = vmax.f32 %v1110_v44, 0.0 }
 0x32a   :  { %v1182_v19 = vpack.c.bf16 %v1164_v8, %v1163_v40 }
 0x32b   :  { %v1181_v49 = vpack.c.bf16 %v1162_v43, %v1161_v46  ;;  %v2161_v18 = vpop.f32.mrb[28].mxu1 }
 0x32c   :  { %v1131_v42 = vadd.f32 %v2161_v18, %v3004_v7  ;;  %v1122_v31 = vpop.f32.mrb[29].mxu1 }
 0x32d   :  { %v1123_v52 = vadd.f32 %v3004_v7, %v1122_v31  ;;  %v2162_v27 = vpop.f32.mrb[30].mxu1  ;;  %2203 = vmatprep.mubr.bf16.mxu0 %v1181_v49 }
 0x32e   :  { %v1134_v55 = vadd.f32 %v2162_v27, %v3004_v7  ;;  %v1125_v41 = vpop.f32.mrb[31].mxu1  ;;  %2204 = vmatmul.mubr.bf16.gmra.mrb[56].mxu0 %v1182_v19  ;;  %v1167_v47 = vmax.f32 %v1131_v42, 0.0 }
 0x32f   :  { %v1126_v56 = vadd.f32 %v3004_v7, %v1125_v41  ;;  %v1165_v33 = vmax.f32 %v1123_v52, 0.0 }
 0x330   :  { %v1168_v30 = vmax.f32 %v1134_v55, 0.0 }
 0x331   :  { %v1166_v37 = vmax.f32 %v1126_v56, 0.0 }
 0x332   :  { %v1184_v16 = vpack.c.bf16 %v1168_v30, %v1167_v47 }
 0x333   :  { %v1183_v11 = vpack.c.bf16 %v1166_v37, %v1165_v33 }
 0x335   :  { %2207 = vmatprep.mubr.bf16.mxu0 %v1183_v11 }
 0x336   :  { %2208 = vmatmul.mubr.bf16.gmra.mrb[60].mxu0 %v1184_v16 }
 0x3d1   :  { %v2181_v2 = vpop.f32.mrb[32].mxu0 }
 0x3d2   :  { %v1299_v7 = vadd.f32 %v2181_v2, %v3044_v26  ;;  %v1290_v45 = vpop.f32.mrb[33].mxu0 }
 0x3d3   :  { %v1291_v48 = vadd.f32 %v3044_v26, %v1290_v45  ;;  %v2182_v61 = vpop.f32.mrb[34].mxu0 }
 0x3d4   :  { %v1979_v12 = vpack.c.bf16 %v1299_v7, %v1299_v7  ;;  %v1302_v60 = vadd.f32 %v2182_v61, %v3044_v26  ;;  %v1293_v1 = vpop.f32.mrb[35].mxu0 }
 0x3d5   :  { %v1977_v36 = vpack.c.bf16 %v1291_v48, %v1291_v48  ;;  %v1294_v59 = vadd.f32 %v3044_v26, %v1293_v1 }
 0x3d6   :  { %1548 = vst.msk [vmem:[%s3395_s11 + $0x8] sm:$0xf] %vm1545_vm3, %v1979_v12  ;;  %v1418_v50 = vpack.c.bf16 %v1302_v60, %v1299_v7  ;;  %v1980_v22 = vpack.c.bf16 %v1302_v60, %v1302_v60 }
 0x3d7   :  { %1546 = vst.msk [vmem:[%s3395_s11] sm:$0xf] %vm1545_vm3, %v1977_v36  ;;  %v1417_v54 = vpack.c.bf16 %v1294_v59, %v1291_v48  ;;  %v1978_v53 = vpack.c.bf16 %v1294_v59, %v1294_v59 }
 0x3d8   :  { %1549 = vst.msk [vmem:[%s3395_s11 + $0xc] sm:$0xf] %vm1545_vm3, %v1980_v22 }
 0x3d9   :  { %1547 = vst.msk [vmem:[%s3395_s11 + $0x4] sm:$0xf] %vm1545_vm3, %v1978_v53  ;;  %v2185_v51 = vpop.f32.mrb[36].mxu0  ;;  %2217 = vmatprep.mubr.msk.bf16.mxu1 %vm1609_vm4, %v1417_v54 }
 0x3da   :  { %v1315_v25 = vadd.f32 %v2185_v51, %v3044_v26  ;;  %v1306_v13 = vpop.f32.mrb[37].mxu0  ;;  %2218 = vmatmul.mubr.msk.bf16.vlgmr.msra.gmra.mrb[32].mxu1 %vm1609_vm4, %v1418_v50 }
 0x3db   :  { %v1307_v15 = vadd.f32 %v3044_v26, %v1306_v13  ;;  %v2186_v23 = vpop.f32.mrb[38].mxu0 }
 0x3dc   :  { %v1983_v6 = vpack.c.bf16 %v1315_v25, %v1315_v25  ;;  %v1318_v57 = vadd.f32 %v2186_v23, %v3044_v26  ;;  %v1309_v62 = vpop.f32.mrb[39].mxu0 }
 0x3dd   :  { %v1981_v63 = vpack.c.bf16 %v1307_v15, %v1307_v15  ;;  %v1310_v17 = vadd.f32 %v3044_v26, %v1309_v62 }
 0x3de   :  { %1552 = vst.msk [vmem:[%s3395_s11 + $0x18] sm:$0xf] %vm1545_vm3, %v1983_v6  ;;  %v1420_v21 = vpack.c.bf16 %v1318_v57, %v1315_v25  ;;  %v1984_v58 = vpack.c.bf16 %v1318_v57, %v1318_v57 }
 0x3df   :  { %1550 = vst.msk [vmem:[%s3395_s11 + $0x10] sm:$0xf] %vm1545_vm3, %v1981_v63  ;;  %v1419_v4 = vpack.c.bf16 %v1310_v17, %v1307_v15  ;;  %v1982_v0 = vpack.c.bf16 %v1310_v17, %v1310_v17 }
 0x3e0   :  { %1553 = vst.msk [vmem:[%s3395_s11 + $0x1c] sm:$0xf] %vm1545_vm3, %v1984_v58 }
 0x3e1   :  { %1551 = vst.msk [vmem:[%s3395_s11 + $0x14] sm:$0xf] %vm1545_vm3, %v1982_v0  ;;  %v2189_v5 = vpop.f32.mrb[40].mxu0  ;;  %2221 = vmatprep.mubr.msk.bf16.mxu1 %vm1609_vm4, %v1419_v4 }
 0x3e2   :  { %v1331_v3 = vadd.f32 %v2189_v5, %v3044_v26  ;;  %v1322_v14 = vpop.f32.mrb[41].mxu0  ;;  %2222 = vmatmul.mubr.msk.bf16.gmra.mrb[36].mxu1 %vm1609_vm4, %v1420_v21 }
 0x3e3   :  { %v1323_v20 = vadd.f32 %v3044_v26, %v1322_v14  ;;  %v2190_v28 = vpop.f32.mrb[42].mxu0 }
 0x3e4   :  { %v1987_v24 = vpack.c.bf16 %v1331_v3, %v1331_v3  ;;  %v1334_v32 = vadd.f32 %v2190_v28, %v3044_v26  ;;  %v1325_v35 = vpop.f32.mrb[43].mxu0 }
 0x3e5   :  { %v1985_v39 = vpack.c.bf16 %v1323_v20, %v1323_v20  ;;  %v1326_v9 = vadd.f32 %v3044_v26, %v1325_v35 }
 0x3e6   :  { %1556 = vst.msk [vmem:[%s3395_s11 + $0x28] sm:$0xf] %vm1545_vm3, %v1987_v24  ;;  %v1422_v10 = vpack.c.bf16 %v1334_v32, %v1331_v3  ;;  %v1988_v34 = vpack.c.bf16 %v1334_v32, %v1334_v32 }
 0x3e7   :  { %1554 = vst.msk [vmem:[%s3395_s11 + $0x20] sm:$0xf] %vm1545_vm3, %v1985_v39  ;;  %v1421_v29 = vpack.c.bf16 %v1326_v9, %v1323_v20  ;;  %v1986_v44 = vpack.c.bf16 %v1326_v9, %v1326_v9 }
 0x3e8   :  { %1557 = vst.msk [vmem:[%s3395_s11 + $0x2c] sm:$0xf] %vm1545_vm3, %v1988_v34 }
 0x3e9   :  { %1555 = vst.msk [vmem:[%s3395_s11 + $0x24] sm:$0xf] %vm1545_vm3, %v1986_v44  ;;  %v2193_v40 = vpop.f32.mrb[44].mxu0  ;;  %2225 = vmatprep.mubr.msk.bf16.mxu1 %vm1609_vm4, %v1421_v29 }
 0x3ea   :  { %v1347_v8 = vadd.f32 %v2193_v40, %v3044_v26  ;;  %v1338_v46 = vpop.f32.mrb[45].mxu0  ;;  %2226 = vmatmul.mubr.msk.bf16.gmra.mrb[40].mxu1 %vm1609_vm4, %v1422_v10 }
 0x3eb   :  { %v1339_v43 = vadd.f32 %v3044_v26, %v1338_v46  ;;  %v2194_v19 = vpop.f32.mrb[46].mxu0 }
 0x3ec   :  { %v1991_v49 = vpack.c.bf16 %v1347_v8, %v1347_v8  ;;  %v1350_v18 = vadd.f32 %v2194_v19, %v3044_v26  ;;  %v1341_v42 = vpop.f32.mrb[47].mxu0 }
 0x3ed   :  { %v1989_v31 = vpack.c.bf16 %v1339_v43, %v1339_v43  ;;  %v1342_v52 = vadd.f32 %v3044_v26, %v1341_v42 }
 0x3ee   :  { %1560 = vst.msk [vmem:[%s3395_s11 + $0x38] sm:$0xf] %vm1545_vm3, %v1991_v49  ;;  %v1424_v27 = vpack.c.bf16 %v1350_v18, %v1347_v8  ;;  %v1992_v55 = vpack.c.bf16 %v1350_v18, %v1350_v18 }
 0x3ef   :  { %1558 = vst.msk [vmem:[%s3395_s11 + $0x30] sm:$0xf] %vm1545_vm3, %v1989_v31  ;;  %v1423_v41 = vpack.c.bf16 %v1342_v52, %v1339_v43  ;;  %v1990_v56 = vpack.c.bf16 %v1342_v52, %v1342_v52 }
 0x3f0   :  { %1561 = vst.msk [vmem:[%s3395_s11 + $0x3c] sm:$0xf] %vm1545_vm3, %v1992_v55 }
 0x3f1   :  { %1559 = vst.msk [vmem:[%s3395_s11 + $0x34] sm:$0xf] %vm1545_vm3, %v1990_v56  ;;  %v2197_v47 = vpop.f32.mrb[48].mxu0  ;;  %2229 = vmatprep.mubr.msk.bf16.mxu1 %vm1609_vm4, %v1423_v41 }
 0x3f2   :  { %v1363_v30 = vadd.f32 %v2197_v47, %v3044_v26  ;;  %v1354_v33 = vpop.f32.mrb[49].mxu0  ;;  %2230 = vmatmul.mubr.msk.bf16.gmra.mrb[44].mxu1 %vm1609_vm4, %v1424_v27 }
 0x3f3   :  { %v1355_v37 = vadd.f32 %v3044_v26, %v1354_v33  ;;  %v2198_v16 = vpop.f32.mrb[50].mxu0 }
 0x3f4   :  { %v1995_v11 = vpack.c.bf16 %v1363_v30, %v1363_v30  ;;  %v1366_v38 = vadd.f32 %v2198_v16, %v3044_v26  ;;  %v1357_v2 = vpop.f32.mrb[51].mxu0 }
 0x3f5   :  { %v1993_v7 = vpack.c.bf16 %v1355_v37, %v1355_v37  ;;  %v1358_v45 = vadd.f32 %v3044_v26, %v1357_v2 }
 0x3f6   :  { %1564 = vst.msk [vmem:[%s3395_s11 + $0x48] sm:$0xf] %vm1545_vm3, %v1995_v11  ;;  %v1426_v48 = vpack.c.bf16 %v1366_v38, %v1363_v30  ;;  %v1996_v61 = vpack.c.bf16 %v1366_v38, %v1366_v38 }
 0x3f7   :  { %1562 = vst.msk [vmem:[%s3395_s11 + $0x40] sm:$0xf] %vm1545_vm3, %v1993_v7  ;;  %v1425_v12 = vpack.c.bf16 %v1358_v45, %v1355_v37  ;;  %v1994_v60 = vpack.c.bf16 %v1358_v45, %v1358_v45 }
 0x3f8   :  { %1565 = vst.msk [vmem:[%s3395_s11 + $0x4c] sm:$0xf] %vm1545_vm3, %v1996_v61 }
 0x3f9   :  { %1563 = vst.msk [vmem:[%s3395_s11 + $0x44] sm:$0xf] %vm1545_vm3, %v1994_v60  ;;  %v2201_v1 = vpop.f32.mrb[52].mxu0  ;;  %2233 = vmatprep.mubr.msk.bf16.mxu1 %vm1609_vm4, %v1425_v12 }
 0x3fa   :  { %v1379_v36 = vadd.f32 %v2201_v1, %v3044_v26  ;;  %v1370_v59 = vpop.f32.mrb[53].mxu0  ;;  %2234 = vmatmul.mubr.msk.bf16.gmra.mrb[48].mxu1 %vm1609_vm4, %v1426_v48 }
 0x3fb   :  { %v1371_v50 = vadd.f32 %v3044_v26, %v1370_v59  ;;  %v2202_v22 = vpop.f32.mrb[54].mxu0 }
 0x3fc   :  { %v1999_v54 = vpack.c.bf16 %v1379_v36, %v1379_v36  ;;  %v1382_v53 = vadd.f32 %v2202_v22, %v3044_v26  ;;  %v1373_v51 = vpop.f32.mrb[55].mxu0 }
 0x3fd   :  { %v1997_v25 = vpack.c.bf16 %v1371_v50, %v1371_v50  ;;  %v1374_v13 = vadd.f32 %v3044_v26, %v1373_v51 }
 0x3fe   :  { %1568 = vst.msk [vmem:[%s3395_s11 + $0x58] sm:$0xf] %vm1545_vm3, %v1999_v54  ;;  %v1428_v15 = vpack.c.bf16 %v1382_v53, %v1379_v36  ;;  %v2000_v23 = vpack.c.bf16 %v1382_v53, %v1382_v53 }
 0x3ff   :  { %1566 = vst.msk [vmem:[%s3395_s11 + $0x50] sm:$0xf] %vm1545_vm3, %v1997_v25  ;;  %v1427_v6 = vpack.c.bf16 %v1374_v13, %v1371_v50  ;;  %v1998_v57 = vpack.c.bf16 %v1374_v13, %v1374_v13 }
 0x400   :  { %1569 = vst.msk [vmem:[%s3395_s11 + $0x5c] sm:$0xf] %vm1545_vm3, %v2000_v23 }
 0x401   :  { %1567 = vst.msk [vmem:[%s3395_s11 + $0x54] sm:$0xf] %vm1545_vm3, %v1998_v57  ;;  %v2205_v62 = vpop.f32.mrb[56].mxu0  ;;  %2237 = vmatprep.mubr.msk.bf16.mxu1 %vm1609_vm4, %v1427_v6 }
 0x402   :  { %v1395_v63 = vadd.f32 %v2205_v62, %v3044_v26  ;;  %v1386_v17 = vpop.f32.mrb[57].mxu0  ;;  %2238 = vmatmul.mubr.msk.bf16.gmra.mrb[52].mxu1 %vm1609_vm4, %v1428_v15 }
 0x403   :  { %v1387_v21 = vadd.f32 %v3044_v26, %v1386_v17  ;;  %v2206_v58 = vpop.f32.mrb[58].mxu0 }
 0x404   :  { %v2003_v4 = vpack.c.bf16 %v1395_v63, %v1395_v63  ;;  %v1398_v0 = vadd.f32 %v2206_v58, %v3044_v26  ;;  %v1389_v5 = vpop.f32.mrb[59].mxu0 }
 0x405   :  { %v2001_v3 = vpack.c.bf16 %v1387_v21, %v1387_v21  ;;  %v1390_v14 = vadd.f32 %v3044_v26, %v1389_v5 }
 0x406   :  { %1572 = vst.msk [vmem:[%s3395_s11 + $0x68] sm:$0xf] %vm1545_vm3, %v2003_v4  ;;  %v1430_v20 = vpack.c.bf16 %v1398_v0, %v1395_v63  ;;  %v2004_v28 = vpack.c.bf16 %v1398_v0, %v1398_v0 }
 0x407   :  { %1570 = vst.msk [vmem:[%s3395_s11 + $0x60] sm:$0xf] %vm1545_vm3, %v2001_v3  ;;  %v1429_v24 = vpack.c.bf16 %v1390_v14, %v1387_v21  ;;  %v2002_v32 = vpack.c.bf16 %v1390_v14, %v1390_v14 }
 0x408   :  { %1573 = vst.msk [vmem:[%s3395_s11 + $0x6c] sm:$0xf] %vm1545_vm3, %v2004_v28 }
 0x409   :  { %1571 = vst.msk [vmem:[%s3395_s11 + $0x64] sm:$0xf] %vm1545_vm3, %v2002_v32  ;;  %v2209_v35 = vpop.f32.mrb[60].mxu0  ;;  %2241 = vmatprep.mubr.msk.bf16.mxu1 %vm1609_vm4, %v1429_v24 }
 0x40a   :  { %v1411_v39 = vadd.f32 %v2209_v35, %v3044_v26  ;;  %v1402_v9 = vpop.f32.mrb[61].mxu0  ;;  %2242 = vmatmul.mubr.msk.bf16.gmra.mrb[56].mxu1 %vm1609_vm4, %v1430_v20 }
 0x40b   :  { %v1403_v10 = vadd.f32 %v3044_v26, %v1402_v9  ;;  %v2210_v34 = vpop.f32.mrb[62].mxu0 }
 0x40c   :  { %v2007_v29 = vpack.c.bf16 %v1411_v39, %v1411_v39  ;;  %v1414_v44 = vadd.f32 %v2210_v34, %v3044_v26  ;;  %v1405_v40 = vpop.f32.mrb[63].mxu0 }
 0x40d   :  { %v2005_v8 = vpack.c.bf16 %v1403_v10, %v1403_v10  ;;  %v1406_v46 = vadd.f32 %v3044_v26, %v1405_v40  ;;  %v3222_v26 = vld [vmem:[#allocation2] ss:$0 sm:$0xff] }
 0x40e   :  { %1576 = vst.msk [vmem:[%s3395_s11 + $0x78] sm:$0xf] %vm1545_vm3, %v2007_v29  ;;  %v1432_v43 = vpack.c.bf16 %v1414_v44, %v1411_v39  ;;  %v2008_v19 = vpack.c.bf16 %v1414_v44, %v1414_v44 }
 0x40f   :  { %1574 = vst.msk [vmem:[%s3395_s11 + $0x70] sm:$0xf] %vm1545_vm3, %v2005_v8  ;;  %v1431_v49 = vpack.c.bf16 %v1406_v46, %v1403_v10  ;;  %v2006_v18 = vpack.c.bf16 %v1406_v46, %v1406_v46 }
 0x410   :  { %1577 = vst.msk [vmem:[%s3395_s11 + $0x7c] sm:$0xf] %vm1545_vm3, %v2008_v19 }
 0x411   :  { %1575 = vst.msk [vmem:[%s3395_s11 + $0x74] sm:$0xf] %vm1545_vm3, %v2006_v18  ;;  %2245 = vmatprep.mubr.msk.bf16.mxu1 %vm1609_vm4, %v1431_v49 }
 0x412   :  { %2246 = vmatmul.mubr.msk.bf16.gmra.mrb[60].mxu1 %vm1609_vm4, %v1432_v43 }
 0x4ad   :  { %v2219_v42 = vpop.f32.mrb[32].mxu1 }
 0x4ae   :  { %v1701_v31 = vadd.f32 %v2219_v42, %v3222_v26  ;;  %v1692_v52 = vpop.f32.mrb[33].mxu1 }
 0x4af   :  { %v1693_v27 = vadd.f32 %v3222_v26, %v1692_v52  ;;  %v2220_v55 = vpop.f32.mrb[34].mxu1 }
 0x4b0   :  { %1822 = vst.msk [vmem:[%s3396_s12 + $0x10] sm:$0xff] %vm1819_vm5, %v1701_v31  ;;  %v1704_v41 = vadd.f32 %v2220_v55, %v3222_v26  ;;  %v1695_v56 = vpop.f32.mrb[35].mxu1 }
 0x4b1   :  { %1820 = vst.msk [vmem:[%s3396_s12] sm:$0xff] %vm1819_vm5, %v1693_v27  ;;  %v1696_v47 = vadd.f32 %v3222_v26, %v1695_v56 }
 0x4b2   :  { %1823 = vst.msk [vmem:[%s3396_s12 + $0x18] sm:$0xff] %vm1819_vm5, %v1704_v41 }
 0x4b3   :  { %1821 = vst.msk [vmem:[%s3396_s12 + $0x8] sm:$0xff] %vm1819_vm5, %v1696_v47 }
 0x4b5   :  { %v2223_v30 = vpop.f32.mrb[36].mxu1 }
 0x4b6   :  { %v1717_v33 = vadd.f32 %v2223_v30, %v3222_v26  ;;  %v1708_v37 = vpop.f32.mrb[37].mxu1 }
 0x4b7   :  { %v1709_v16 = vadd.f32 %v3222_v26, %v1708_v37  ;;  %v2224_v11 = vpop.f32.mrb[38].mxu1 }
 0x4b8   :  { %1826 = vst.msk [vmem:[%s3396_s12 + $0x30] sm:$0xff] %vm1819_vm5, %v1717_v33  ;;  %v1720_v38 = vadd.f32 %v2224_v11, %v3222_v26  ;;  %v1711_v2 = vpop.f32.mrb[39].mxu1 }
 0x4b9   :  { %1824 = vst.msk [vmem:[%s3396_s12 + $0x20] sm:$0xff] %vm1819_vm5, %v1709_v16  ;;  %v1712_v7 = vadd.f32 %v3222_v26, %v1711_v2 }
 0x4ba   :  { %1827 = vst.msk [vmem:[%s3396_s12 + $0x38] sm:$0xff] %vm1819_vm5, %v1720_v38 }
 0x4bb   :  { %1825 = vst.msk [vmem:[%s3396_s12 + $0x28] sm:$0xff] %vm1819_vm5, %v1712_v7 }
 0x4bd   :  { %v2227_v45 = vpop.f32.mrb[40].mxu1 }
 0x4be   :  { %v1733_v48 = vadd.f32 %v2227_v45, %v3222_v26  ;;  %v1724_v61 = vpop.f32.mrb[41].mxu1 }
 0x4bf   :  { %v1725_v12 = vadd.f32 %v3222_v26, %v1724_v61  ;;  %v2228_v60 = vpop.f32.mrb[42].mxu1 }
 0x4c0   :  { %1830 = vst.msk [vmem:[%s3396_s12 + $0x50] sm:$0xff] %vm1819_vm5, %v1733_v48  ;;  %v1736_v1 = vadd.f32 %v2228_v60, %v3222_v26  ;;  %v1727_v36 = vpop.f32.mrb[43].mxu1 }
 0x4c1   :  { %1828 = vst.msk [vmem:[%s3396_s12 + $0x40] sm:$0xff] %vm1819_vm5, %v1725_v12  ;;  %v1728_v59 = vadd.f32 %v3222_v26, %v1727_v36 }
 0x4c2   :  { %1831 = vst.msk [vmem:[%s3396_s12 + $0x58] sm:$0xff] %vm1819_vm5, %v1736_v1 }
 0x4c3   :  { %1829 = vst.msk [vmem:[%s3396_s12 + $0x48] sm:$0xff] %vm1819_vm5, %v1728_v59 }
 0x4c5   :  { %v2231_v50 = vpop.f32.mrb[44].mxu1 }
 0x4c6   :  { %v1749_v22 = vadd.f32 %v2231_v50, %v3222_v26  ;;  %v1740_v54 = vpop.f32.mrb[45].mxu1 }
 0x4c7   :  { %v1741_v53 = vadd.f32 %v3222_v26, %v1740_v54  ;;  %v2232_v51 = vpop.f32.mrb[46].mxu1 }
 0x4c8   :  { %1834 = vst.msk [vmem:[%s3396_s12 + $0x70] sm:$0xff] %vm1819_vm5, %v1749_v22  ;;  %v1752_v25 = vadd.f32 %v2232_v51, %v3222_v26  ;;  %v1743_v13 = vpop.f32.mrb[47].mxu1 }
 0x4c9   :  { %1832 = vst.msk [vmem:[%s3396_s12 + $0x60] sm:$0xff] %vm1819_vm5, %v1741_v53  ;;  %v1744_v15 = vadd.f32 %v3222_v26, %v1743_v13 }
 0x4ca   :  { %1835 = vst.msk [vmem:[%s3396_s12 + $0x78] sm:$0xff] %vm1819_vm5, %v1752_v25 }
 0x4cb   :  { %1833 = vst.msk [vmem:[%s3396_s12 + $0x68] sm:$0xff] %vm1819_vm5, %v1744_v15 }
 0x4cd   :  { %v2235_v23 = vpop.f32.mrb[48].mxu1 }
 0x4ce   :  { %v1765_v6 = vadd.f32 %v2235_v23, %v3222_v26  ;;  %v1756_v57 = vpop.f32.mrb[49].mxu1 }
 0x4cf   :  { %v1757_v62 = vadd.f32 %v3222_v26, %v1756_v57  ;;  %v2236_v63 = vpop.f32.mrb[50].mxu1 }
 0x4d0   :  { %1838 = vst.msk [vmem:[%s3396_s12 + $0x90] sm:$0xff] %vm1819_vm5, %v1765_v6  ;;  %v1768_v17 = vadd.f32 %v2236_v63, %v3222_v26  ;;  %v1759_v21 = vpop.f32.mrb[51].mxu1 }
 0x4d1   :  { %1836 = vst.msk [vmem:[%s3396_s12 + $0x80] sm:$0xff] %vm1819_vm5, %v1757_v62  ;;  %v1760_v58 = vadd.f32 %v3222_v26, %v1759_v21 }
 0x4d2   :  { %1839 = vst.msk [vmem:[%s3396_s12 + $0x98] sm:$0xff] %vm1819_vm5, %v1768_v17 }
 0x4d3   :  { %1837 = vst.msk [vmem:[%s3396_s12 + $0x88] sm:$0xff] %vm1819_vm5, %v1760_v58 }
 0x4d5   :  { %v2239_v4 = vpop.f32.mrb[52].mxu1 }
 0x4d6   :  { %v1781_v0 = vadd.f32 %v2239_v4, %v3222_v26  ;;  %v1772_v5 = vpop.f32.mrb[53].mxu1 }
 0x4d7   :  { %v1773_v3 = vadd.f32 %v3222_v26, %v1772_v5  ;;  %v2240_v14 = vpop.f32.mrb[54].mxu1 }
 0x4d8   :  { %1842 = vst.msk [vmem:[%s3396_s12 + $0xb0] sm:$0xff] %vm1819_vm5, %v1781_v0  ;;  %v1784_v20 = vadd.f32 %v2240_v14, %v3222_v26  ;;  %v1775_v28 = vpop.f32.mrb[55].mxu1 }
 0x4d9   :  { %1840 = vst.msk [vmem:[%s3396_s12 + $0xa0] sm:$0xff] %vm1819_vm5, %v1773_v3  ;;  %v1776_v24 = vadd.f32 %v3222_v26, %v1775_v28 }
 0x4da   :  { %1843 = vst.msk [vmem:[%s3396_s12 + $0xb8] sm:$0xff] %vm1819_vm5, %v1784_v20 }
 0x4db   :  { %1841 = vst.msk [vmem:[%s3396_s12 + $0xa8] sm:$0xff] %vm1819_vm5, %v1776_v24 }
 0x4dd   :  { %v2243_v32 = vpop.f32.mrb[56].mxu1 }
 0x4de   :  { %v1797_v35 = vadd.f32 %v2243_v32, %v3222_v26  ;;  %v1788_v39 = vpop.f32.mrb[57].mxu1 }
 0x4df   :  { %v1789_v9 = vadd.f32 %v3222_v26, %v1788_v39  ;;  %v2244_v10 = vpop.f32.mrb[58].mxu1 }
 0x4e0   :  { %1846 = vst.msk [vmem:[%s3396_s12 + $0xd0] sm:$0xff] %vm1819_vm5, %v1797_v35  ;;  %v1800_v34 = vadd.f32 %v2244_v10, %v3222_v26  ;;  %v1791_v29 = vpop.f32.mrb[59].mxu1 }
 0x4e1   :  { %1844 = vst.msk [vmem:[%s3396_s12 + $0xc0] sm:$0xff] %vm1819_vm5, %v1789_v9  ;;  %v1792_v44 = vadd.f32 %v3222_v26, %v1791_v29 }
 0x4e2   :  { %1847 = vst.msk [vmem:[%s3396_s12 + $0xd8] sm:$0xff] %vm1819_vm5, %v1800_v34 }
 0x4e3   :  { %1845 = vst.msk [vmem:[%s3396_s12 + $0xc8] sm:$0xff] %vm1819_vm5, %v1792_v44 }
 0x4e5   :  { %v2247_v40 = vpop.f32.mrb[60].mxu1 }
 0x4e6   :  { %v1813_v8 = vadd.f32 %v2247_v40, %v3222_v26  ;;  %v1804_v46 = vpop.f32.mrb[61].mxu1 }
 0x4e7   :  { %v1805_v43 = vadd.f32 %v3222_v26, %v1804_v46  ;;  %v2248_v19 = vpop.f32.mrb[62].mxu1 }
 0x4e8   :  { %1850 = vst.msk [vmem:[%s3396_s12 + $0xf0] sm:$0xff] %vm1819_vm5, %v1813_v8  ;;  %v1816_v49 = vadd.f32 %v2248_v19, %v3222_v26  ;;  %v1807_v18 = vpop.f32.mrb[63].mxu1 }
 0x4e9   :  { %1848 = vst.msk [vmem:[%s3396_s12 + $0xe0] sm:$0xff] %vm1819_vm5, %v1805_v43  ;;  %v1808_v42 = vadd.f32 %v3222_v26, %v1807_v18 }
 0x4ea   :  { %1851 = vst.msk [vmem:[%s3396_s12 + $0xf8] sm:$0xff] %vm1819_vm5, %v1816_v49 }
 0x4eb   :  { %1849 = vst.msk [vmem:[%s3396_s12 + $0xe8] sm:$0xff] %vm1819_vm5, %v1808_v42 }

</bundles_post_ra>
